<compile_context>
chip_gen: v6e
topology: v6e:2x2x1
jax: 0.10.0
libtpu: 0.0.40
codegen_flags: <defaults>
</compile_context>

<pallas_src>
import math
import functools

import jax
import jax.numpy as jnp
from jax import lax
from jax.experimental import pallas as pl
from jax.experimental.pallas import tpu as pltpu

QK_NORM_EPS = 1e-5


def _layernorm_f32(t, w, b, eps):
    mu = jnp.mean(t, axis=-1, keepdims=True)
    var = jnp.mean(jnp.square(t - mu), axis=-1, keepdims=True)
    return (t - mu) * lax.rsqrt(var + eps) * w + b


def attention_kernel(x_ref, wqkv_ref, wo_t_ref,
                     qlw_ref, qlb_ref, klw_ref, klb_ref,
                     cos_ref, sin_ref,
                     out_ref,
                     qkv_scr, o_scr,
                     *, n_heads, head_dim, eps):
    S = x_ref.shape[1]
    HD = n_heads * head_dim

    # ---- fused QKV projection: one bf16 MXU pass, f32 accumulate ----
    x = x_ref[0]                                              # (S, D) bf16
    qkv_scr[...] = jnp.dot(x, wqkv_ref[...],
                           preferred_element_type=jnp.float32)  # (S, 3*H*hd) f32

    # ---- causal mask generated in-kernel (no HBM mask traffic) ----
    row = lax.broadcasted_iota(jnp.int32, (S, S), 0)
    col = lax.broadcasted_iota(jnp.int32, (S, S), 1)
    mask = jnp.where(col <= row, jnp.float32(0.0), jnp.float32(-1e30))

    cos = cos_ref[...]                                        # (S, hd) f32
    sin = sin_ref[...]                                        # (S, hd) f32 (signed)

    def rope(t):
        # de-interleaved rotate-half: one XLU roll per tensor
        return t * cos + pltpu.roll(t, head_dim // 2, axis=1) * sin

    dn_nt = (((1,), (1,)), ((), ()))                          # A @ B^T

    # static unroll over heads (n_heads is a small compile-time constant)
    for h in range(n_heads):
        lo = h * head_dim
        hi = lo + head_dim
        q = qkv_scr[:, lo:hi]                                 # (S, hd) f32
        k = qkv_scr[:, HD + lo:HD + hi]
        v = qkv_scr[:, 2 * HD + lo:2 * HD + hi]

        # qk-LayerNorm (f32); 1/sqrt(hd) is pre-folded into q LN weight/bias
        q = rope(_layernorm_f32(q, qlw_ref[...], qlb_ref[...], eps))
        k = rope(_layernorm_f32(k, klw_ref[...], klb_ref[...], eps))

        # scores (bf16 MXU, f32 accumulate) + causal mask + f32 softmax
        s = lax.dot_general(q.astype(jnp.bfloat16), k.astype(jnp.bfloat16),
                            dn_nt, preferred_element_type=jnp.float32)
        s = s + mask
        m = jnp.max(s, axis=-1, keepdims=True)
        p = jnp.exp(s - m)
        l = jnp.sum(p, axis=-1, keepdims=True)
        p = p * pl.reciprocal(l, approx=True)

        o = jnp.dot(p.astype(jnp.bfloat16), v.astype(jnp.bfloat16),
                    preferred_element_type=jnp.float32)       # (S, hd) f32
        o_scr[:, lo:hi] = o

    # ---- single output projection, single write ----
    out_ref[0] = jnp.dot(o_scr[...].astype(jnp.bfloat16), wo_t_ref[...],
                         preferred_element_type=jnp.float32)


def chameleon_attention(x, wq, wk, wv, wo, q_ln_w, q_ln_b, k_ln_w, k_ln_b,
                        cos, sin, *, n_heads, eps=QK_NORM_EPS):
    B, S, D = x.shape
    hd = D // n_heads
    HD = n_heads * hd
    scale = 1.0 / math.sqrt(hd)

    # de-interleave permutation within each head: [0,2,...,hd-2, 1,3,...,hd-1]
    perm = jnp.concatenate([jnp.arange(0, hd, 2), jnp.arange(1, hd, 2)])
    full_perm = (jnp.arange(n_heads)[:, None] * hd + perm[None, :]).reshape(HD)

    wq_p = wq[full_perm]                                      # (H*hd, D)
    wk_p = wk[full_perm]
    # fused QKV weight, transposed for x @ W, bf16 (halves weight DMA)
    w_qkv_t = jnp.concatenate([wq_p.T, wk_p.T, wv.T], axis=1).astype(jnp.bfloat16)
    wo_t = wo.T.astype(jnp.bfloat16)                          # (H*hd, D)

    # fold 1/sqrt(hd) into q LayerNorm weight/bias (RoPE is linear -> exact)
    qlw = (q_ln_w[perm] * scale).reshape(1, hd)
    qlb = (q_ln_b[perm] * scale).reshape(1, hd)
    klw = k_ln_w[perm].reshape(1, hd)
    klb = k_ln_b[perm].reshape(1, hd)

    # rotate-half RoPE tables for the de-interleaved layout
    cos_de = jnp.concatenate([cos, cos], axis=1)              # (S, hd)
    sin_sg = jnp.concatenate([-sin, sin], axis=1)             # (S, hd)

    x_bf = x.astype(jnp.bfloat16)                             # halve x DMA bytes

    kernel = functools.partial(attention_kernel,
                               n_heads=n_heads, head_dim=hd, eps=eps)

    const2 = lambda shape: pl.BlockSpec(shape, lambda b: (0, 0))

    return pl.pallas_call(
        kernel,
        out_shape=jax.ShapeDtypeStruct((B, S, D), jnp.float32),
        grid=(B,),
        in_specs=[
            pl.BlockSpec((1, S, D), lambda b: (b, 0, 0)),     # x (bf16)
            const2((D, 3 * HD)),                              # fused qkv weight (bf16)
            const2((HD, D)),                                  # wo^T (bf16)
            const2((1, hd)), const2((1, hd)),                 # q_ln w, b (scaled)
            const2((1, hd)), const2((1, hd)),                 # k_ln w, b
            const2((S, hd)), const2((S, hd)),                 # cos, signed sin
        ],
        out_specs=pl.BlockSpec((1, S, D), lambda b: (b, 0, 0)),
        scratch_shapes=[
            pltpu.VMEM((S, 3 * HD), jnp.float32),             # fused QKV projections
            pltpu.VMEM((S, HD), jnp.float32),                 # concatenated per-head o
        ],
        compiler_params=pltpu.CompilerParams(
            dimension_semantics=("parallel",),                # batch across TCs
            vmem_limit_bytes=32 * 1024 * 1024,
        ),
    )(x_bf, w_qkv_t, wo_t, qlw, qlb, klw, klb, cos_de, sin_sg)


# ---------- pure-JAX f32 reference (mirrors the PyTorch forward) ----------
def reference_attention(x, wq, wk, wv, wo, qlw, qlb, klw, klb,
                        cos, sin, mask, n_heads, eps):
    B, S, D = x.shape
    hd = D // n_heads
    q = (x @ wq.T).reshape(B, S, n_heads, hd)
    k = (x @ wk.T).reshape(B, S, n_heads, hd)
    v = (x @ wv.T).reshape(B, S, n_heads, hd)
    q = _layernorm_f32(q, qlw, qlb, eps)
    k = _layernorm_f32(k, klw, klb, eps)
    cos_b = cos[None, :, None, :]
    sin_b = sin[None, :, None, :]

    def rope(t):
        tr = t[..., 0::2]
        ti = t[..., 1::2]
        orr = tr * cos_b - ti * sin_b
        oii = tr * sin_b + ti * cos_b
        return jnp.stack([orr, oii], axis=-1).reshape(t.shape)

    q = rope(q)
    k = rope(k)
    scores = jnp.einsum('bqhd,bkhd->bhqk', q, k) / math.sqrt(hd)
    scores = scores + mask[None, None]
    p = jax.nn.softmax(scores.astype(jnp.float32), axis=-1)
    o = jnp.einsum('bhqk,bkhd->bqhd', p, v).reshape(B, S, D)
    return o @ wo.T


if __name__ == "__main__":
    # Small, shape-consistent config: dim=64, n_heads=4, head_dim=16, seq=16, batch=2
    B, S, D, H = 2, 16, 64, 4
    hd = D // H

    key = jax.random.PRNGKey(0)
    ks = jax.random.split(key, 8)
    x = jax.random.normal(ks[0], (B, S, D), jnp.float32)
    wq = jax.random.normal(ks[1], (D, D), jnp.float32) * 0.05
    wk = jax.random.normal(ks[2], (D, D), jnp.float32) * 0.05
    wv = jax.random.normal(ks[3], (D, D), jnp.float32) * 0.05
    wo = jax.random.normal(ks[4], (D, D), jnp.float32) * 0.05
    q_ln_w = 1.0 + 0.1 * jax.random.normal(ks[5], (hd,), jnp.float32)
    q_ln_b = 0.1 * jax.random.normal(ks[6], (hd,), jnp.float32)
    k_ln_w = 1.0 + 0.1 * jax.random.normal(ks[7], (hd,), jnp.float32)
    k_ln_b = jnp.zeros((hd,), jnp.float32)

    # rotary tables: real/imag parts of freqs_cis, shape (seqlen, head_dim // 2)
    inv_freq = 1.0 / (10000.0 ** (jnp.arange(0, hd, 2, dtype=jnp.float32) / hd))
    angles = jnp.arange(S, dtype=jnp.float32)[:, None] * inv_freq[None, :]
    cos = jnp.cos(angles)
    sin = jnp.sin(angles)

    out = chameleon_attention(x, wq, wk, wv, wo, q_ln_w, q_ln_b, k_ln_w, k_ln_b,
                              cos, sin, n_heads=H)
    out = jax.block_until_ready(out)

    # additive causal mask for the f32 reference (kernel builds its own in-kernel)
    idx = jnp.arange(S)
    mask = jnp.where(idx[None, :] <= idx[:, None], 0.0, -1e9).astype(jnp.float32)
    ref = reference_attention(x, wq, wk, wv, wo, q_ln_w, q_ln_b, k_ln_w, k_ln_b,
                              cos, sin, mask, H, QK_NORM_EPS)

    assert out.shape == (B, S, D)
    max_err = float(jnp.max(jnp.abs(out - ref)))
    # bf16 matmuls with f32 accumulation vs. pure-f32 reference
    assert max_err < 2e-2, f"max abs err {max_err}"
    print("KERNEL_OK")
</pallas_src>

<mosaic_0001>
module attributes {stable_mosaic.version = 11 : i64} {
  func.func @attention_kernel(%arg0: i32, %arg1: memref<1x16x64xbf16, #tpu.memory_space<vmem>>, %arg2: memref<64x192xbf16, #tpu.memory_space<vmem>>, %arg3: memref<64x64xbf16, #tpu.memory_space<vmem>>, %arg4: memref<1x16xf32, #tpu.memory_space<vmem>>, %arg5: memref<1x16xf32, #tpu.memory_space<vmem>>, %arg6: memref<1x16xf32, #tpu.memory_space<vmem>>, %arg7: memref<1x16xf32, #tpu.memory_space<vmem>>, %arg8: memref<16x16xf32, #tpu.memory_space<vmem>>, %arg9: memref<16x16xf32, #tpu.memory_space<vmem>>, %arg10: memref<1x16x64xf32, #tpu.memory_space<vmem>>, %arg11: memref<16x192xf32, #tpu.memory_space<vmem>>, %arg12: memref<16x64xf32, #tpu.memory_space<vmem>>) attributes {dimension_semantics = [#tpu.dimension_semantics<parallel>], iteration_bounds = array<i64: 2>, scalar_prefetch = 0 : i64, scratch_operands = 2 : i64, tpu.core_type = #tpu.core_type<tc>, window_params = [{transform_indices = @transform_0, window_bounds = array<i64: 1, 16, 64>}, {pipeline_mode = #tpu.pipeline_mode<synchronous>, transform_indices = @transform_1, window_bounds = array<i64: 64, 192>}, {pipeline_mode = #tpu.pipeline_mode<synchronous>, transform_indices = @transform_2, window_bounds = array<i64: 64, 64>}, {pipeline_mode = #tpu.pipeline_mode<synchronous>, transform_indices = @transform_3, window_bounds = array<i64: 1, 16>}, {pipeline_mode = #tpu.pipeline_mode<synchronous>, transform_indices = @transform_4, window_bounds = array<i64: 1, 16>}, {pipeline_mode = #tpu.pipeline_mode<synchronous>, transform_indices = @transform_5, window_bounds = array<i64: 1, 16>}, {pipeline_mode = #tpu.pipeline_mode<synchronous>, transform_indices = @transform_6, window_bounds = array<i64: 1, 16>}, {pipeline_mode = #tpu.pipeline_mode<synchronous>, transform_indices = @transform_7, window_bounds = array<i64: 16, 16>}, {pipeline_mode = #tpu.pipeline_mode<synchronous>, transform_indices = @transform_8, window_bounds = array<i64: 16, 16>}, {transform_indices = @transform_9, window_bounds = array<i64: 1, 16, 64>}]} {
    %c0 = arith.constant 0 : index
    %c0_0 = arith.constant 0 : index
    %c0_1 = arith.constant 0 : index
    %0 = vector.load %arg1[%c0, %c0_0, %c0_1] : memref<1x16x64xbf16, #tpu.memory_space<vmem>>, vector<1x16x64xbf16>
    %1 = vector.shape_cast %0 : vector<1x16x64xbf16> to vector<16x64xbf16>
    %c0_2 = arith.constant 0 : index
    %c0_3 = arith.constant 0 : index
    %2 = vector.load %arg2[%c0_2, %c0_3] : memref<64x192xbf16, #tpu.memory_space<vmem>>, vector<64x192xbf16>
    %cst = arith.constant dense<0.000000e+00> : vector<16x192xf32>
    %3 = tpu.matmul %1, %2, %cst {dimension_numbers = #tpu.dot_dimension_numbers<[1], [0], [0], [1], [0, 0, 1, 1], [], []>} : vector<16x64xbf16>, vector<64x192xbf16>, vector<16x192xf32> -> vector<16x192xf32>
    %c0_4 = arith.constant 0 : index
    %c0_5 = arith.constant 0 : index
    %4 = vector.load %arg11[%c0_4, %c0_5] : memref<16x192xf32, #tpu.memory_space<vmem>>, vector<16x192xf32>
    tpu.vector_store %arg11[%c0_4, %c0_5], %3 {strides = array<i32>} : memref<16x192xf32, #tpu.memory_space<vmem>>, vector<16x192xf32>,
    %5 = tpu.iota {dimensions = array<i32: 0>} : vector<16x16xi32>
    %6 = tpu.iota {dimensions = array<i32: 1>} : vector<16x16xi32>
    %7 = arith.cmpi sle, %6, %5 : vector<16x16xi32>
    %cst_6 = arith.constant 0.000000e+00 : f32
    %cst_7 = arith.constant -1.000000e+30 : f32
    %8 = vector.broadcast %cst_6 : f32 to vector<16x16xf32>
    %9 = vector.broadcast %cst_7 : f32 to vector<16x16xf32>
    %10 = arith.select %7, %8, %9 : vector<16x16xi1>, vector<16x16xf32>
    %c0_8 = arith.constant 0 : index
    %c0_9 = arith.constant 0 : index
    %11 = vector.load %arg8[%c0_8, %c0_9] : memref<16x16xf32, #tpu.memory_space<vmem>>, vector<16x16xf32>
    %c0_10 = arith.constant 0 : index
    %c0_11 = arith.constant 0 : index
    %12 = vector.load %arg9[%c0_10, %c0_11] : memref<16x16xf32, #tpu.memory_space<vmem>>, vector<16x16xf32>
    %c0_12 = arith.constant 0 : index
    %c0_13 = arith.constant 0 : index
    %13 = vector.load %arg11[%c0_12, %c0_13] : memref<16x192xf32, #tpu.memory_space<vmem>>, vector<16x16xf32>
    %c0_14 = arith.constant 0 : index
    %c64 = arith.constant 64 : index
    %14 = vector.load %arg11[%c0_14, %c64] : memref<16x192xf32, #tpu.memory_space<vmem>>, vector<16x16xf32>
    %c0_15 = arith.constant 0 : index
    %c128 = arith.constant 128 : index
    %15 = vector.load %arg11[%c0_15, %c128] : memref<16x192xf32, #tpu.memory_space<vmem>>, vector<16x16xf32>
    %c0_16 = arith.constant 0 : index
    %c0_17 = arith.constant 0 : index
    %16 = vector.load %arg4[%c0_16, %c0_17] : memref<1x16xf32, #tpu.memory_space<vmem>>, vector<1x16xf32>
    %c0_18 = arith.constant 0 : index
    %c0_19 = arith.constant 0 : index
    %17 = vector.load %arg5[%c0_18, %c0_19] : memref<1x16xf32, #tpu.memory_space<vmem>>, vector<1x16xf32>
    %cst_20 = arith.constant dense<0.000000e+00> : vector<16xf32>
    %18 = vector.multi_reduction <add>, %13, %cst_20 [1] : vector<16x16xf32> to vector<16xf32>
    %19 = vector.shape_cast %18 : vector<16xf32> to vector<16x1xf32>
    %cst_21 = arith.constant 1.600000e+01 : f32
    %20 = vector.broadcast %cst_21 : f32 to vector<16x1xf32>
    %21 = arith.divf %19, %20 : vector<16x1xf32>
    %22 = vector.broadcast %21 : vector<16x1xf32> to vector<16x16xf32>
    %23 = arith.subf %13, %22 : vector<16x16xf32>
    %24 = arith.mulf %23, %23 : vector<16x16xf32>
    %cst_22 = arith.constant dense<0.000000e+00> : vector<16xf32>
    %25 = vector.multi_reduction <add>, %24, %cst_22 [1] : vector<16x16xf32> to vector<16xf32>
    %26 = vector.shape_cast %25 : vector<16xf32> to vector<16x1xf32>
    %cst_23 = arith.constant 1.600000e+01 : f32
    %27 = vector.broadcast %cst_23 : f32 to vector<16x1xf32>
    %28 = arith.divf %26, %27 : vector<16x1xf32>
    %29 = vector.broadcast %21 : vector<16x1xf32> to vector<16x16xf32>
    %30 = arith.subf %13, %29 : vector<16x16xf32>
    %cst_24 = arith.constant 9.99999974E-6 : f32
    %31 = vector.broadcast %cst_24 : f32 to vector<16x1xf32>
    %32 = arith.addf %28, %31 : vector<16x1xf32>
    %33 = math.rsqrt %32 : vector<16x1xf32>
    %34 = vector.broadcast %33 : vector<16x1xf32> to vector<16x16xf32>
    %35 = arith.mulf %30, %34 : vector<16x16xf32>
    %36 = vector.broadcast %16 : vector<1x16xf32> to vector<16x16xf32>
    %37 = arith.mulf %35, %36 : vector<16x16xf32>
    %38 = vector.broadcast %17 : vector<1x16xf32> to vector<16x16xf32>
    %39 = arith.addf %37, %38 : vector<16x16xf32>
    %40 = arith.mulf %39, %11 : vector<16x16xf32>
    %c8_i32 = arith.constant 8 : i32
    %41 = tpu.dynamic_rotate %39 by %c8_i32 dim 1 : vector<16x16xf32>, i32 -> vector<16x16xf32>
    %42 = arith.mulf %41, %12 : vector<16x16xf32>
    %43 = arith.addf %40, %42 : vector<16x16xf32>
    %c0_25 = arith.constant 0 : index
    %c0_26 = arith.constant 0 : index
    %44 = vector.load %arg6[%c0_25, %c0_26] : memref<1x16xf32, #tpu.memory_space<vmem>>, vector<1x16xf32>
    %c0_27 = arith.constant 0 : index
    %c0_28 = arith.constant 0 : index
    %45 = vector.load %arg7[%c0_27, %c0_28] : memref<1x16xf32, #tpu.memory_space<vmem>>, vector<1x16xf32>
    %cst_29 = arith.constant dense<0.000000e+00> : vector<16xf32>
    %46 = vector.multi_reduction <add>, %14, %cst_29 [1] : vector<16x16xf32> to vector<16xf32>
    %47 = vector.shape_cast %46 : vector<16xf32> to vector<16x1xf32>
    %cst_30 = arith.constant 1.600000e+01 : f32
    %48 = vector.broadcast %cst_30 : f32 to vector<16x1xf32>
    %49 = arith.divf %47, %48 : vector<16x1xf32>
    %50 = vector.broadcast %49 : vector<16x1xf32> to vector<16x16xf32>
    %51 = arith.subf %14, %50 : vector<16x16xf32>
    %52 = arith.mulf %51, %51 : vector<16x16xf32>
    %cst_31 = arith.constant dense<0.000000e+00> : vector<16xf32>
    %53 = vector.multi_reduction <add>, %52, %cst_31 [1] : vector<16x16xf32> to vector<16xf32>
    %54 = vector.shape_cast %53 : vector<16xf32> to vector<16x1xf32>
    %cst_32 = arith.constant 1.600000e+01 : f32
    %55 = vector.broadcast %cst_32 : f32 to vector<16x1xf32>
    %56 = arith.divf %54, %55 : vector<16x1xf32>
    %57 = vector.broadcast %49 : vector<16x1xf32> to vector<16x16xf32>
    %58 = arith.subf %14, %57 : vector<16x16xf32>
    %cst_33 = arith.constant 9.99999974E-6 : f32
    %59 = vector.broadcast %cst_33 : f32 to vector<16x1xf32>
    %60 = arith.addf %56, %59 : vector<16x1xf32>
    %61 = math.rsqrt %60 : vector<16x1xf32>
    %62 = vector.broadcast %61 : vector<16x1xf32> to vector<16x16xf32>
    %63 = arith.mulf %58, %62 : vector<16x16xf32>
    %64 = vector.broadcast %44 : vector<1x16xf32> to vector<16x16xf32>
    %65 = arith.mulf %63, %64 : vector<16x16xf32>
    %66 = vector.broadcast %45 : vector<1x16xf32> to vector<16x16xf32>
    %67 = arith.addf %65, %66 : vector<16x16xf32>
    %68 = arith.mulf %67, %11 : vector<16x16xf32>
    %c8_i32_34 = arith.constant 8 : i32
    %69 = tpu.dynamic_rotate %67 by %c8_i32_34 dim 1 : vector<16x16xf32>, i32 -> vector<16x16xf32>
    %70 = arith.mulf %69, %12 : vector<16x16xf32>
    %71 = arith.addf %68, %70 : vector<16x16xf32>
    %72 = arith.truncf %43 : vector<16x16xf32> to vector<16x16xbf16>
    %73 = arith.truncf %71 : vector<16x16xf32> to vector<16x16xbf16>
    %cst_35 = arith.constant dense<0.000000e+00> : vector<16x16xf32>
    %74 = tpu.matmul %72, %73, %cst_35 {dimension_numbers = #tpu.dot_dimension_numbers<[1], [1], [0], [0], [0, 0, 1, 0], [], []>} : vector<16x16xbf16>, vector<16x16xbf16>, vector<16x16xf32> -> vector<16x16xf32>
    %75 = arith.addf %74, %10 : vector<16x16xf32>
    %cst_36 = arith.constant dense<0xFF800000> : vector<16xf32>
    %76 = vector.multi_reduction <maximumf>, %75, %cst_36 [1] : vector<16x16xf32> to vector<16xf32>
    %77 = vector.shape_cast %76 : vector<16xf32> to vector<16x1xf32>
    %78 = vector.broadcast %77 : vector<16x1xf32> to vector<16x16xf32>
    %79 = arith.subf %75, %78 : vector<16x16xf32>
    %80 = math.exp %79 : vector<16x16xf32>
    %cst_37 = arith.constant dense<0.000000e+00> : vector<16xf32>
    %81 = vector.multi_reduction <add>, %80, %cst_37 [1] : vector<16x16xf32> to vector<16xf32>
    %82 = vector.shape_cast %81 : vector<16xf32> to vector<16x1xf32>
    %83 = tpu.reciprocal %82 {approx = true} : vector<16x1xf32> -> vector<16x1xf32>
    %84 = vector.broadcast %83 : vector<16x1xf32> to vector<16x16xf32>
    %85 = arith.mulf %80, %84 : vector<16x16xf32>
    %86 = arith.truncf %85 : vector<16x16xf32> to vector<16x16xbf16>
    %87 = arith.truncf %15 : vector<16x16xf32> to vector<16x16xbf16>
    %cst_38 = arith.constant dense<0.000000e+00> : vector<16x16xf32>
    %88 = tpu.matmul %86, %87, %cst_38 {dimension_numbers = #tpu.dot_dimension_numbers<[1], [0], [0], [1], [0, 0, 1, 1], [], []>} : vector<16x16xbf16>, vector<16x16xbf16>, vector<16x16xf32> -> vector<16x16xf32>
    %c0_39 = arith.constant 0 : index
    %c0_40 = arith.constant 0 : index
    %89 = vector.load %arg12[%c0_39, %c0_40] : memref<16x64xf32, #tpu.memory_space<vmem>>, vector<16x16xf32>
    tpu.vector_store %arg12[%c0_39, %c0_40], %88 {strides = array<i32>} : memref<16x64xf32, #tpu.memory_space<vmem>>, vector<16x16xf32>,
    %c0_41 = arith.constant 0 : index
    %c16 = arith.constant 16 : index
    %90 = vector.load %arg11[%c0_41, %c16] : memref<16x192xf32, #tpu.memory_space<vmem>>, vector<16x16xf32>
    %c0_42 = arith.constant 0 : index
    %c80 = arith.constant 80 : index
    %91 = vector.load %arg11[%c0_42, %c80] : memref<16x192xf32, #tpu.memory_space<vmem>>, vector<16x16xf32>
    %c0_43 = arith.constant 0 : index
    %c144 = arith.constant 144 : index
    %92 = vector.load %arg11[%c0_43, %c144] : memref<16x192xf32, #tpu.memory_space<vmem>>, vector<16x16xf32>
    %c0_44 = arith.constant 0 : index
    %c0_45 = arith.constant 0 : index
    %93 = vector.load %arg4[%c0_44, %c0_45] : memref<1x16xf32, #tpu.memory_space<vmem>>, vector<1x16xf32>
    %c0_46 = arith.constant 0 : index
    %c0_47 = arith.constant 0 : index
    %94 = vector.load %arg5[%c0_46, %c0_47] : memref<1x16xf32, #tpu.memory_space<vmem>>, vector<1x16xf32>
    %cst_48 = arith.constant dense<0.000000e+00> : vector<16xf32>
    %95 = vector.multi_reduction <add>, %90, %cst_48 [1] : vector<16x16xf32> to vector<16xf32>
    %96 = vector.shape_cast %95 : vector<16xf32> to vector<16x1xf32>
    %cst_49 = arith.constant 1.600000e+01 : f32
    %97 = vector.broadcast %cst_49 : f32 to vector<16x1xf32>
    %98 = arith.divf %96, %97 : vector<16x1xf32>
    %99 = vector.broadcast %98 : vector<16x1xf32> to vector<16x16xf32>
    %100 = arith.subf %90, %99 : vector<16x16xf32>
    %101 = arith.mulf %100, %100 : vector<16x16xf32>
    %cst_50 = arith.constant dense<0.000000e+00> : vector<16xf32>
    %102 = vector.multi_reduction <add>, %101, %cst_50 [1] : vector<16x16xf32> to vector<16xf32>
    %103 = vector.shape_cast %102 : vector<16xf32> to vector<16x1xf32>
    %cst_51 = arith.constant 1.600000e+01 : f32
    %104 = vector.broadcast %cst_51 : f32 to vector<16x1xf32>
    %105 = arith.divf %103, %104 : vector<16x1xf32>
    %106 = vector.broadcast %98 : vector<16x1xf32> to vector<16x16xf32>
    %107 = arith.subf %90, %106 : vector<16x16xf32>
    %cst_52 = arith.constant 9.99999974E-6 : f32
    %108 = vector.broadcast %cst_52 : f32 to vector<16x1xf32>
    %109 = arith.addf %105, %108 : vector<16x1xf32>
    %110 = math.rsqrt %109 : vector<16x1xf32>
    %111 = vector.broadcast %110 : vector<16x1xf32> to vector<16x16xf32>
    %112 = arith.mulf %107, %111 : vector<16x16xf32>
    %113 = vector.broadcast %93 : vector<1x16xf32> to vector<16x16xf32>
    %114 = arith.mulf %112, %113 : vector<16x16xf32>
    %115 = vector.broadcast %94 : vector<1x16xf32> to vector<16x16xf32>
    %116 = arith.addf %114, %115 : vector<16x16xf32>
    %117 = arith.mulf %116, %11 : vector<16x16xf32>
    %c8_i32_53 = arith.constant 8 : i32
    %118 = tpu.dynamic_rotate %116 by %c8_i32_53 dim 1 : vector<16x16xf32>, i32 -> vector<16x16xf32>
    %119 = arith.mulf %118, %12 : vector<16x16xf32>
    %120 = arith.addf %117, %119 : vector<16x16xf32>
    %c0_54 = arith.constant 0 : index
    %c0_55 = arith.constant 0 : index
    %121 = vector.load %arg6[%c0_54, %c0_55] : memref<1x16xf32, #tpu.memory_space<vmem>>, vector<1x16xf32>
    %c0_56 = arith.constant 0 : index
    %c0_57 = arith.constant 0 : index
    %122 = vector.load %arg7[%c0_56, %c0_57] : memref<1x16xf32, #tpu.memory_space<vmem>>, vector<1x16xf32>
    %cst_58 = arith.constant dense<0.000000e+00> : vector<16xf32>
    %123 = vector.multi_reduction <add>, %91, %cst_58 [1] : vector<16x16xf32> to vector<16xf32>
    %124 = vector.shape_cast %123 : vector<16xf32> to vector<16x1xf32>
    %cst_59 = arith.constant 1.600000e+01 : f32
    %125 = vector.broadcast %cst_59 : f32 to vector<16x1xf32>
    %126 = arith.divf %124, %125 : vector<16x1xf32>
    %127 = vector.broadcast %126 : vector<16x1xf32> to vector<16x16xf32>
    %128 = arith.subf %91, %127 : vector<16x16xf32>
    %129 = arith.mulf %128, %128 : vector<16x16xf32>
    %cst_60 = arith.constant dense<0.000000e+00> : vector<16xf32>
    %130 = vector.multi_reduction <add>, %129, %cst_60 [1] : vector<16x16xf32> to vector<16xf32>
    %131 = vector.shape_cast %130 : vector<16xf32> to vector<16x1xf32>
    %cst_61 = arith.constant 1.600000e+01 : f32
    %132 = vector.broadcast %cst_61 : f32 to vector<16x1xf32>
    %133 = arith.divf %131, %132 : vector<16x1xf32>
    %134 = vector.broadcast %126 : vector<16x1xf32> to vector<16x16xf32>
    %135 = arith.subf %91, %134 : vector<16x16xf32>
    %cst_62 = arith.constant 9.99999974E-6 : f32
    %136 = vector.broadcast %cst_62 : f32 to vector<16x1xf32>
    %137 = arith.addf %133, %136 : vector<16x1xf32>
    %138 = math.rsqrt %137 : vector<16x1xf32>
    %139 = vector.broadcast %138 : vector<16x1xf32> to vector<16x16xf32>
    %140 = arith.mulf %135, %139 : vector<16x16xf32>
    %141 = vector.broadcast %121 : vector<1x16xf32> to vector<16x16xf32>
    %142 = arith.mulf %140, %141 : vector<16x16xf32>
    %143 = vector.broadcast %122 : vector<1x16xf32> to vector<16x16xf32>
    %144 = arith.addf %142, %143 : vector<16x16xf32>
    %145 = arith.mulf %144, %11 : vector<16x16xf32>
    %c8_i32_63 = arith.constant 8 : i32
    %146 = tpu.dynamic_rotate %144 by %c8_i32_63 dim 1 : vector<16x16xf32>, i32 -> vector<16x16xf32>
    %147 = arith.mulf %146, %12 : vector<16x16xf32>
    %148 = arith.addf %145, %147 : vector<16x16xf32>
    %149 = arith.truncf %120 : vector<16x16xf32> to vector<16x16xbf16>
    %150 = arith.truncf %148 : vector<16x16xf32> to vector<16x16xbf16>
    %cst_64 = arith.constant dense<0.000000e+00> : vector<16x16xf32>
    %151 = tpu.matmul %149, %150, %cst_64 {dimension_numbers = #tpu.dot_dimension_numbers<[1], [1], [0], [0], [0, 0, 1, 0], [], []>} : vector<16x16xbf16>, vector<16x16xbf16>, vector<16x16xf32> -> vector<16x16xf32>
    %152 = arith.addf %151, %10 : vector<16x16xf32>
    %cst_65 = arith.constant dense<0xFF800000> : vector<16xf32>
    %153 = vector.multi_reduction <maximumf>, %152, %cst_65 [1] : vector<16x16xf32> to vector<16xf32>
    %154 = vector.shape_cast %153 : vector<16xf32> to vector<16x1xf32>
    %155 = vector.broadcast %154 : vector<16x1xf32> to vector<16x16xf32>
    %156 = arith.subf %152, %155 : vector<16x16xf32>
    %157 = math.exp %156 : vector<16x16xf32>
    %cst_66 = arith.constant dense<0.000000e+00> : vector<16xf32>
    %158 = vector.multi_reduction <add>, %157, %cst_66 [1] : vector<16x16xf32> to vector<16xf32>
    %159 = vector.shape_cast %158 : vector<16xf32> to vector<16x1xf32>
    %160 = tpu.reciprocal %159 {approx = true} : vector<16x1xf32> -> vector<16x1xf32>
    %161 = vector.broadcast %160 : vector<16x1xf32> to vector<16x16xf32>
    %162 = arith.mulf %157, %161 : vector<16x16xf32>
    %163 = arith.truncf %162 : vector<16x16xf32> to vector<16x16xbf16>
    %164 = arith.truncf %92 : vector<16x16xf32> to vector<16x16xbf16>
    %cst_67 = arith.constant dense<0.000000e+00> : vector<16x16xf32>
    %165 = tpu.matmul %163, %164, %cst_67 {dimension_numbers = #tpu.dot_dimension_numbers<[1], [0], [0], [1], [0, 0, 1, 1], [], []>} : vector<16x16xbf16>, vector<16x16xbf16>, vector<16x16xf32> -> vector<16x16xf32>
    %c0_68 = arith.constant 0 : index
    %c16_69 = arith.constant 16 : index
    %166 = vector.load %arg12[%c0_68, %c16_69] : memref<16x64xf32, #tpu.memory_space<vmem>>, vector<16x16xf32>
    tpu.vector_store %arg12[%c0_68, %c16_69], %165 {strides = array<i32>} : memref<16x64xf32, #tpu.memory_space<vmem>>, vector<16x16xf32>,
    %c0_70 = arith.constant 0 : index
    %c32 = arith.constant 32 : index
    %167 = vector.load %arg11[%c0_70, %c32] : memref<16x192xf32, #tpu.memory_space<vmem>>, vector<16x16xf32>
    %c0_71 = arith.constant 0 : index
    %c96 = arith.constant 96 : index
    %168 = vector.load %arg11[%c0_71, %c96] : memref<16x192xf32, #tpu.memory_space<vmem>>, vector<16x16xf32>
    %c0_72 = arith.constant 0 : index
    %c160 = arith.constant 160 : index
    %169 = vector.load %arg11[%c0_72, %c160] : memref<16x192xf32, #tpu.memory_space<vmem>>, vector<16x16xf32>
    %c0_73 = arith.constant 0 : index
    %c0_74 = arith.constant 0 : index
    %170 = vector.load %arg4[%c0_73, %c0_74] : memref<1x16xf32, #tpu.memory_space<vmem>>, vector<1x16xf32>
    %c0_75 = arith.constant 0 : index
    %c0_76 = arith.constant 0 : index
    %171 = vector.load %arg5[%c0_75, %c0_76] : memref<1x16xf32, #tpu.memory_space<vmem>>, vector<1x16xf32>
    %cst_77 = arith.constant dense<0.000000e+00> : vector<16xf32>
    %172 = vector.multi_reduction <add>, %167, %cst_77 [1] : vector<16x16xf32> to vector<16xf32>
    %173 = vector.shape_cast %172 : vector<16xf32> to vector<16x1xf32>
    %cst_78 = arith.constant 1.600000e+01 : f32
    %174 = vector.broadcast %cst_78 : f32 to vector<16x1xf32>
    %175 = arith.divf %173, %174 : vector<16x1xf32>
    %176 = vector.broadcast %175 : vector<16x1xf32> to vector<16x16xf32>
    %177 = arith.subf %167, %176 : vector<16x16xf32>
    %178 = arith.mulf %177, %177 : vector<16x16xf32>
    %cst_79 = arith.constant dense<0.000000e+00> : vector<16xf32>
    %179 = vector.multi_reduction <add>, %178, %cst_79 [1] : vector<16x16xf32> to vector<16xf32>
    %180 = vector.shape_cast %179 : vector<16xf32> to vector<16x1xf32>
    %cst_80 = arith.constant 1.600000e+01 : f32
    %181 = vector.broadcast %cst_80 : f32 to vector<16x1xf32>
    %182 = arith.divf %180, %181 : vector<16x1xf32>
    %183 = vector.broadcast %175 : vector<16x1xf32> to vector<16x16xf32>
    %184 = arith.subf %167, %183 : vector<16x16xf32>
    %cst_81 = arith.constant 9.99999974E-6 : f32
    %185 = vector.broadcast %cst_81 : f32 to vector<16x1xf32>
    %186 = arith.addf %182, %185 : vector<16x1xf32>
    %187 = math.rsqrt %186 : vector<16x1xf32>
    %188 = vector.broadcast %187 : vector<16x1xf32> to vector<16x16xf32>
    %189 = arith.mulf %184, %188 : vector<16x16xf32>
    %190 = vector.broadcast %170 : vector<1x16xf32> to vector<16x16xf32>
    %191 = arith.mulf %189, %190 : vector<16x16xf32>
    %192 = vector.broadcast %171 : vector<1x16xf32> to vector<16x16xf32>
    %193 = arith.addf %191, %192 : vector<16x16xf32>
    %194 = arith.mulf %193, %11 : vector<16x16xf32>
    %c8_i32_82 = arith.constant 8 : i32
    %195 = tpu.dynamic_rotate %193 by %c8_i32_82 dim 1 : vector<16x16xf32>, i32 -> vector<16x16xf32>
    %196 = arith.mulf %195, %12 : vector<16x16xf32>
    %197 = arith.addf %194, %196 : vector<16x16xf32>
    %c0_83 = arith.constant 0 : index
    %c0_84 = arith.constant 0 : index
    %198 = vector.load %arg6[%c0_83, %c0_84] : memref<1x16xf32, #tpu.memory_space<vmem>>, vector<1x16xf32>
    %c0_85 = arith.constant 0 : index
    %c0_86 = arith.constant 0 : index
    %199 = vector.load %arg7[%c0_85, %c0_86] : memref<1x16xf32, #tpu.memory_space<vmem>>, vector<1x16xf32>
    %cst_87 = arith.constant dense<0.000000e+00> : vector<16xf32>
    %200 = vector.multi_reduction <add>, %168, %cst_87 [1] : vector<16x16xf32> to vector<16xf32>
    %201 = vector.shape_cast %200 : vector<16xf32> to vector<16x1xf32>
    %cst_88 = arith.constant 1.600000e+01 : f32
    %202 = vector.broadcast %cst_88 : f32 to vector<16x1xf32>
    %203 = arith.divf %201, %202 : vector<16x1xf32>
    %204 = vector.broadcast %203 : vector<16x1xf32> to vector<16x16xf32>
    %205 = arith.subf %168, %204 : vector<16x16xf32>
    %206 = arith.mulf %205, %205 : vector<16x16xf32>
    %cst_89 = arith.constant dense<0.000000e+00> : vector<16xf32>
    %207 = vector.multi_reduction <add>, %206, %cst_89 [1] : vector<16x16xf32> to vector<16xf32>
    %208 = vector.shape_cast %207 : vector<16xf32> to vector<16x1xf32>
    %cst_90 = arith.constant 1.600000e+01 : f32
    %209 = vector.broadcast %cst_90 : f32 to vector<16x1xf32>
    %210 = arith.divf %208, %209 : vector<16x1xf32>
    %211 = vector.broadcast %203 : vector<16x1xf32> to vector<16x16xf32>
    %212 = arith.subf %168, %211 : vector<16x16xf32>
    %cst_91 = arith.constant 9.99999974E-6 : f32
    %213 = vector.broadcast %cst_91 : f32 to vector<16x1xf32>
    %214 = arith.addf %210, %213 : vector<16x1xf32>
    %215 = math.rsqrt %214 : vector<16x1xf32>
    %216 = vector.broadcast %215 : vector<16x1xf32> to vector<16x16xf32>
    %217 = arith.mulf %212, %216 : vector<16x16xf32>
    %218 = vector.broadcast %198 : vector<1x16xf32> to vector<16x16xf32>
    %219 = arith.mulf %217, %218 : vector<16x16xf32>
    %220 = vector.broadcast %199 : vector<1x16xf32> to vector<16x16xf32>
    %221 = arith.addf %219, %220 : vector<16x16xf32>
    %222 = arith.mulf %221, %11 : vector<16x16xf32>
    %c8_i32_92 = arith.constant 8 : i32
    %223 = tpu.dynamic_rotate %221 by %c8_i32_92 dim 1 : vector<16x16xf32>, i32 -> vector<16x16xf32>
    %224 = arith.mulf %223, %12 : vector<16x16xf32>
    %225 = arith.addf %222, %224 : vector<16x16xf32>
    %226 = arith.truncf %197 : vector<16x16xf32> to vector<16x16xbf16>
    %227 = arith.truncf %225 : vector<16x16xf32> to vector<16x16xbf16>
    %cst_93 = arith.constant dense<0.000000e+00> : vector<16x16xf32>
    %228 = tpu.matmul %226, %227, %cst_93 {dimension_numbers = #tpu.dot_dimension_numbers<[1], [1], [0], [0], [0, 0, 1, 0], [], []>} : vector<16x16xbf16>, vector<16x16xbf16>, vector<16x16xf32> -> vector<16x16xf32>
    %229 = arith.addf %228, %10 : vector<16x16xf32>
    %cst_94 = arith.constant dense<0xFF800000> : vector<16xf32>
    %230 = vector.multi_reduction <maximumf>, %229, %cst_94 [1] : vector<16x16xf32> to vector<16xf32>
    %231 = vector.shape_cast %230 : vector<16xf32> to vector<16x1xf32>
    %232 = vector.broadcast %231 : vector<16x1xf32> to vector<16x16xf32>
    %233 = arith.subf %229, %232 : vector<16x16xf32>
    %234 = math.exp %233 : vector<16x16xf32>
    %cst_95 = arith.constant dense<0.000000e+00> : vector<16xf32>
    %235 = vector.multi_reduction <add>, %234, %cst_95 [1] : vector<16x16xf32> to vector<16xf32>
    %236 = vector.shape_cast %235 : vector<16xf32> to vector<16x1xf32>
    %237 = tpu.reciprocal %236 {approx = true} : vector<16x1xf32> -> vector<16x1xf32>
    %238 = vector.broadcast %237 : vector<16x1xf32> to vector<16x16xf32>
    %239 = arith.mulf %234, %238 : vector<16x16xf32>
    %240 = arith.truncf %239 : vector<16x16xf32> to vector<16x16xbf16>
    %241 = arith.truncf %169 : vector<16x16xf32> to vector<16x16xbf16>
    %cst_96 = arith.constant dense<0.000000e+00> : vector<16x16xf32>
    %242 = tpu.matmul %240, %241, %cst_96 {dimension_numbers = #tpu.dot_dimension_numbers<[1], [0], [0], [1], [0, 0, 1, 1], [], []>} : vector<16x16xbf16>, vector<16x16xbf16>, vector<16x16xf32> -> vector<16x16xf32>
    %c0_97 = arith.constant 0 : index
    %c32_98 = arith.constant 32 : index
    %243 = vector.load %arg12[%c0_97, %c32_98] : memref<16x64xf32, #tpu.memory_space<vmem>>, vector<16x16xf32>
    tpu.vector_store %arg12[%c0_97, %c32_98], %242 {strides = array<i32>} : memref<16x64xf32, #tpu.memory_space<vmem>>, vector<16x16xf32>,
    %c0_99 = arith.constant 0 : index
    %c48 = arith.constant 48 : index
    %244 = vector.load %arg11[%c0_99, %c48] : memref<16x192xf32, #tpu.memory_space<vmem>>, vector<16x16xf32>
    %c0_100 = arith.constant 0 : index
    %c112 = arith.constant 112 : index
    %245 = vector.load %arg11[%c0_100, %c112] : memref<16x192xf32, #tpu.memory_space<vmem>>, vector<16x16xf32>
    %c0_101 = arith.constant 0 : index
    %c176 = arith.constant 176 : index
    %246 = vector.load %arg11[%c0_101, %c176] : memref<16x192xf32, #tpu.memory_space<vmem>>, vector<16x16xf32>
    %c0_102 = arith.constant 0 : index
    %c0_103 = arith.constant 0 : index
    %247 = vector.load %arg4[%c0_102, %c0_103] : memref<1x16xf32, #tpu.memory_space<vmem>>, vector<1x16xf32>
    %c0_104 = arith.constant 0 : index
    %c0_105 = arith.constant 0 : index
    %248 = vector.load %arg5[%c0_104, %c0_105] : memref<1x16xf32, #tpu.memory_space<vmem>>, vector<1x16xf32>
    %cst_106 = arith.constant dense<0.000000e+00> : vector<16xf32>
    %249 = vector.multi_reduction <add>, %244, %cst_106 [1] : vector<16x16xf32> to vector<16xf32>
    %250 = vector.shape_cast %249 : vector<16xf32> to vector<16x1xf32>
    %cst_107 = arith.constant 1.600000e+01 : f32
    %251 = vector.broadcast %cst_107 : f32 to vector<16x1xf32>
    %252 = arith.divf %250, %251 : vector<16x1xf32>
    %253 = vector.broadcast %252 : vector<16x1xf32> to vector<16x16xf32>
    %254 = arith.subf %244, %253 : vector<16x16xf32>
    %255 = arith.mulf %254, %254 : vector<16x16xf32>
    %cst_108 = arith.constant dense<0.000000e+00> : vector<16xf32>
    %256 = vector.multi_reduction <add>, %255, %cst_108 [1] : vector<16x16xf32> to vector<16xf32>
    %257 = vector.shape_cast %256 : vector<16xf32> to vector<16x1xf32>
    %cst_109 = arith.constant 1.600000e+01 : f32
    %258 = vector.broadcast %cst_109 : f32 to vector<16x1xf32>
    %259 = arith.divf %257, %258 : vector<16x1xf32>
    %260 = vector.broadcast %252 : vector<16x1xf32> to vector<16x16xf32>
    %261 = arith.subf %244, %260 : vector<16x16xf32>
    %cst_110 = arith.constant 9.99999974E-6 : f32
    %262 = vector.broadcast %cst_110 : f32 to vector<16x1xf32>
    %263 = arith.addf %259, %262 : vector<16x1xf32>
    %264 = math.rsqrt %263 : vector<16x1xf32>
    %265 = vector.broadcast %264 : vector<16x1xf32> to vector<16x16xf32>
    %266 = arith.mulf %261, %265 : vector<16x16xf32>
    %267 = vector.broadcast %247 : vector<1x16xf32> to vector<16x16xf32>
    %268 = arith.mulf %266, %267 : vector<16x16xf32>
    %269 = vector.broadcast %248 : vector<1x16xf32> to vector<16x16xf32>
    %270 = arith.addf %268, %269 : vector<16x16xf32>
    %271 = arith.mulf %270, %11 : vector<16x16xf32>
    %c8_i32_111 = arith.constant 8 : i32
    %272 = tpu.dynamic_rotate %270 by %c8_i32_111 dim 1 : vector<16x16xf32>, i32 -> vector<16x16xf32>
    %273 = arith.mulf %272, %12 : vector<16x16xf32>
    %274 = arith.addf %271, %273 : vector<16x16xf32>
    %c0_112 = arith.constant 0 : index
    %c0_113 = arith.constant 0 : index
    %275 = vector.load %arg6[%c0_112, %c0_113] : memref<1x16xf32, #tpu.memory_space<vmem>>, vector<1x16xf32>
    %c0_114 = arith.constant 0 : index
    %c0_115 = arith.constant 0 : index
    %276 = vector.load %arg7[%c0_114, %c0_115] : memref<1x16xf32, #tpu.memory_space<vmem>>, vector<1x16xf32>
    %cst_116 = arith.constant dense<0.000000e+00> : vector<16xf32>
    %277 = vector.multi_reduction <add>, %245, %cst_116 [1] : vector<16x16xf32> to vector<16xf32>
    %278 = vector.shape_cast %277 : vector<16xf32> to vector<16x1xf32>
    %cst_117 = arith.constant 1.600000e+01 : f32
    %279 = vector.broadcast %cst_117 : f32 to vector<16x1xf32>
    %280 = arith.divf %278, %279 : vector<16x1xf32>
    %281 = vector.broadcast %280 : vector<16x1xf32> to vector<16x16xf32>
    %282 = arith.subf %245, %281 : vector<16x16xf32>
    %283 = arith.mulf %282, %282 : vector<16x16xf32>
    %cst_118 = arith.constant dense<0.000000e+00> : vector<16xf32>
    %284 = vector.multi_reduction <add>, %283, %cst_118 [1] : vector<16x16xf32> to vector<16xf32>
    %285 = vector.shape_cast %284 : vector<16xf32> to vector<16x1xf32>
    %cst_119 = arith.constant 1.600000e+01 : f32
    %286 = vector.broadcast %cst_119 : f32 to vector<16x1xf32>
    %287 = arith.divf %285, %286 : vector<16x1xf32>
    %288 = vector.broadcast %280 : vector<16x1xf32> to vector<16x16xf32>
    %289 = arith.subf %245, %288 : vector<16x16xf32>
    %cst_120 = arith.constant 9.99999974E-6 : f32
    %290 = vector.broadcast %cst_120 : f32 to vector<16x1xf32>
    %291 = arith.addf %287, %290 : vector<16x1xf32>
    %292 = math.rsqrt %291 : vector<16x1xf32>
    %293 = vector.broadcast %292 : vector<16x1xf32> to vector<16x16xf32>
    %294 = arith.mulf %289, %293 : vector<16x16xf32>
    %295 = vector.broadcast %275 : vector<1x16xf32> to vector<16x16xf32>
    %296 = arith.mulf %294, %295 : vector<16x16xf32>
    %297 = vector.broadcast %276 : vector<1x16xf32> to vector<16x16xf32>
    %298 = arith.addf %296, %297 : vector<16x16xf32>
    %299 = arith.mulf %298, %11 : vector<16x16xf32>
    %c8_i32_121 = arith.constant 8 : i32
    %300 = tpu.dynamic_rotate %298 by %c8_i32_121 dim 1 : vector<16x16xf32>, i32 -> vector<16x16xf32>
    %301 = arith.mulf %300, %12 : vector<16x16xf32>
    %302 = arith.addf %299, %301 : vector<16x16xf32>
    %303 = arith.truncf %274 : vector<16x16xf32> to vector<16x16xbf16>
    %304 = arith.truncf %302 : vector<16x16xf32> to vector<16x16xbf16>
    %cst_122 = arith.constant dense<0.000000e+00> : vector<16x16xf32>
    %305 = tpu.matmul %303, %304, %cst_122 {dimension_numbers = #tpu.dot_dimension_numbers<[1], [1], [0], [0], [0, 0, 1, 0], [], []>} : vector<16x16xbf16>, vector<16x16xbf16>, vector<16x16xf32> -> vector<16x16xf32>
    %306 = arith.addf %305, %10 : vector<16x16xf32>
    %cst_123 = arith.constant dense<0xFF800000> : vector<16xf32>
    %307 = vector.multi_reduction <maximumf>, %306, %cst_123 [1] : vector<16x16xf32> to vector<16xf32>
    %308 = vector.shape_cast %307 : vector<16xf32> to vector<16x1xf32>
    %309 = vector.broadcast %308 : vector<16x1xf32> to vector<16x16xf32>
    %310 = arith.subf %306, %309 : vector<16x16xf32>
    %311 = math.exp %310 : vector<16x16xf32>
    %cst_124 = arith.constant dense<0.000000e+00> : vector<16xf32>
    %312 = vector.multi_reduction <add>, %311, %cst_124 [1] : vector<16x16xf32> to vector<16xf32>
    %313 = vector.shape_cast %312 : vector<16xf32> to vector<16x1xf32>
    %314 = tpu.reciprocal %313 {approx = true} : vector<16x1xf32> -> vector<16x1xf32>
    %315 = vector.broadcast %314 : vector<16x1xf32> to vector<16x16xf32>
    %316 = arith.mulf %311, %315 : vector<16x16xf32>
    %317 = arith.truncf %316 : vector<16x16xf32> to vector<16x16xbf16>
    %318 = arith.truncf %246 : vector<16x16xf32> to vector<16x16xbf16>
    %cst_125 = arith.constant dense<0.000000e+00> : vector<16x16xf32>
    %319 = tpu.matmul %317, %318, %cst_125 {dimension_numbers = #tpu.dot_dimension_numbers<[1], [0], [0], [1], [0, 0, 1, 1], [], []>} : vector<16x16xbf16>, vector<16x16xbf16>, vector<16x16xf32> -> vector<16x16xf32>
    %c0_126 = arith.constant 0 : index
    %c48_127 = arith.constant 48 : index
    %320 = vector.load %arg12[%c0_126, %c48_127] : memref<16x64xf32, #tpu.memory_space<vmem>>, vector<16x16xf32>
    tpu.vector_store %arg12[%c0_126, %c48_127], %319 {strides = array<i32>} : memref<16x64xf32, #tpu.memory_space<vmem>>, vector<16x16xf32>,
    %c0_128 = arith.constant 0 : index
    %c0_129 = arith.constant 0 : index
    %321 = vector.load %arg12[%c0_128, %c0_129] : memref<16x64xf32, #tpu.memory_space<vmem>>, vector<16x64xf32>
    %322 = arith.truncf %321 : vector<16x64xf32> to vector<16x64xbf16>
    %c0_130 = arith.constant 0 : index
    %c0_131 = arith.constant 0 : index
    %323 = vector.load %arg3[%c0_130, %c0_131] : memref<64x64xbf16, #tpu.memory_space<vmem>>, vector<64x64xbf16>
    %cst_132 = arith.constant dense<0.000000e+00> : vector<16x64xf32>
    %324 = tpu.matmul %322, %323, %cst_132 {dimension_numbers = #tpu.dot_dimension_numbers<[1], [0], [0], [1], [0, 0, 1, 1], [], []>} : vector<16x64xbf16>, vector<64x64xbf16>, vector<16x64xf32> -> vector<16x64xf32>
    %c0_133 = arith.constant 0 : index
    %c0_134 = arith.constant 0 : index
    %c0_135 = arith.constant 0 : index
    %325 = vector.load %arg10[%c0_133, %c0_134, %c0_135] : memref<1x16x64xf32, #tpu.memory_space<vmem>>, vector<1x16x64xf32>
    %326 = vector.shape_cast %325 : vector<1x16x64xf32> to vector<16x64xf32>
    %327 = vector.shape_cast %324 : vector<16x64xf32> to vector<1x16x64xf32>
    tpu.vector_store %arg10[%c0_133, %c0_134, %c0_135], %327 {strides = array<i32>} : memref<1x16x64xf32, #tpu.memory_space<vmem>>, vector<1x16x64xf32>,
    return
  }
  func.func @transform_0(%arg0: i32) -> (i32, i32, i32) {
    %c0_i32 = arith.constant 0 : i32
    %c0_i32_0 = arith.constant 0 : i32
    %c0_i32_1 = arith.constant 0 : i32
    return %arg0, %c0_i32, %c0_i32_0 : i32, i32, i32
  }
  func.func @transform_1(%arg0: i32) -> (i32, i32) {
    %c0_i32 = arith.constant 0 : i32
    %c0_i32_0 = arith.constant 0 : i32
    %c0_i32_1 = arith.constant 0 : i32
    return %c0_i32, %c0_i32_0 : i32, i32
  }
  func.func @transform_2(%arg0: i32) -> (i32, i32) {
    %c0_i32 = arith.constant 0 : i32
    %c0_i32_0 = arith.constant 0 : i32
    %c0_i32_1 = arith.constant 0 : i32
    return %c0_i32, %c0_i32_0 : i32, i32
  }
  func.func @transform_3(%arg0: i32) -> (i32, i32) {
    %c0_i32 = arith.constant 0 : i32
    %c0_i32_0 = arith.constant 0 : i32
    %c0_i32_1 = arith.constant 0 : i32
    return %c0_i32, %c0_i32_0 : i32, i32
  }
  func.func @transform_4(%arg0: i32) -> (i32, i32) {
    %c0_i32 = arith.constant 0 : i32
    %c0_i32_0 = arith.constant 0 : i32
    %c0_i32_1 = arith.constant 0 : i32
    return %c0_i32, %c0_i32_0 : i32, i32
  }
  func.func @transform_5(%arg0: i32) -> (i32, i32) {
    %c0_i32 = arith.constant 0 : i32
    %c0_i32_0 = arith.constant 0 : i32
    %c0_i32_1 = arith.constant 0 : i32
    return %c0_i32, %c0_i32_0 : i32, i32
  }
  func.func @transform_6(%arg0: i32) -> (i32, i32) {
    %c0_i32 = arith.constant 0 : i32
    %c0_i32_0 = arith.constant 0 : i32
    %c0_i32_1 = arith.constant 0 : i32
    return %c0_i32, %c0_i32_0 : i32, i32
  }
  func.func @transform_7(%arg0: i32) -> (i32, i32) {
    %c0_i32 = arith.constant 0 : i32
    %c0_i32_0 = arith.constant 0 : i32
    %c0_i32_1 = arith.constant 0 : i32
    return %c0_i32, %c0_i32_0 : i32, i32
  }
  func.func @transform_8(%arg0: i32) -> (i32, i32) {
    %c0_i32 = arith.constant 0 : i32
    %c0_i32_0 = arith.constant 0 : i32
    %c0_i32_1 = arith.constant 0 : i32
    return %c0_i32, %c0_i32_0 : i32, i32
  }
  func.func @transform_9(%arg0: i32) -> (i32, i32, i32) {
    %c0_i32 = arith.constant 0 : i32
    %c0_i32_0 = arith.constant 0 : i32
    %c0_i32_1 = arith.constant 0 : i32
    return %arg0, %c0_i32, %c0_i32_0 : i32, i32, i32
  }
}

</mosaic_0001>

<bundles_post_ra>
// kernel: tpu_custom_call.1
= control target key start
LH: loop header
LB: loop body
LE: loop exit
PB: predicated region body
PF: predicated region fallthrough
CT: control target
= control target key end

     0   :  { %s3572_s0 = inlined_call_operand.hbm [shape: bf16[2,16,64], index: 0, kind: input, shape index: {}]   ;;  %s3573_s1 = inlined_call_operand.hbm [shape: bf16[64,192], index: 1, kind: input, shape index: {}]   ;;  %s3574_s2 = inlined_call_operand.hbm [shape: bf16[64,64], index: 2, kind: input, shape index: {}]   ;;  %s3575_s3 = inlined_call_operand.vmem [shape: f32[1,16], index: 3, kind: input, shape index: {}]   ;;  %s3576_s4 = inlined_call_operand.vmem [shape: f32[1,16], index: 4, kind: input, shape index: {}]   ;;  %s3577_s5 = inlined_call_operand.vmem [shape: f32[1,16], index: 5, kind: input, shape index: {}]   ;;  %s3578_s6 = inlined_call_operand.vmem [shape: f32[1,16], index: 6, kind: input, shape index: {}]   ;;  %s3579_s7 = inlined_call_operand.hbm [shape: f32[16,16], index: 7, kind: input, shape index: {}]   ;;  %s3580_s8 = inlined_call_operand.hbm [shape: f32[16,16], index: 8, kind: input, shape index: {}]   ;;  %s3581_s9 = inlined_call_operand.hbm [shape: f32[2,16,64], index: 9, kind: output, shape index: {}]  }
   0x1   :  { %3588 = sst [smem:[#allocation18_spill]] %s3573_s1 }
   0x2   :  { %3589 = sst [smem:[#allocation19_spill]] %s3574_s2 }
   0x3   :  { %3590 = sst [smem:[#allocation20_spill]] %s3579_s7 }
   0x4   :  { %14 = vsyncpa [#allocation5], 0 }
   0x5   :  { %16 = vsyncpa [#allocation5 + $0x1], 0 }
   0x6   :  { %17 = vsyncpa [#allocation8], 0 }
   0x7   :  { %18 = vsyncpa [#allocation11], 0 }
   0x8   :  { %19 = vsyncpa [#allocation6], 0 }
   0x9   :  { %21 = vsyncpa [#allocation6 + $0x1], 0  ;;  %s2714_s30 = smov 0   ;;  %s2716_s10 = smov 0  }
   0xa   :  { %s2718_s11 = smov 0   ;;  %s2720_s12 = smov 0  }
   0xb LB: > { %s2735_s13 = sadd.s32 4294967295, %s2632_s12   ;;  %s2092_s14 = sadd.s32 4294967294, %s2632_s12   ;;  %s2632_s12 = sphi %s2720_s12, %s3614_s12   ;;  %s2628_s11 = sphi %s2718_s11, %s3613_s11   ;;  %s2624_s10 = sphi %s2716_s10, %s3612_s10   ;;  %s2620_s30 = sphi %s2714_s30, %s3611_s30  }
   0xc   : > { %p47_p0 = scmp.ne.s32.totalorder %s2624_s10, %s2620_s30  ;;  %p3582_p1 = scmp.eq.s32.totalorder %s2735_s13, 0 }
   0xd   : > { %p239_p2 = scmp.eq.s32.totalorder %s2735_s13, 1  ;;  %p245_p3 = scmp.eq.s32.totalorder %s2092_s14, 1 }
   0xe   : > { %p2744_p4 = por %p3582_p1, %p47_p0  ;;  %p2093_p5 = scmp.ge.s32.totalorder %s2632_s12, 1 }
   0xf   : > { %p2749_p6 = por %p245_p3, %p47_p0  ;;  %p252_p7 = scmp.lt.s32.totalorder %s2632_s12, 3 }
  0x10   : > { %s3591_s15 = scalar_select %p2744_p4, 1, 0 }
  0x11   : > { %s3592_s16 = scalar_select %p2749_p6, 1, 0 }
  0x12   : > { %p2754_p8 = pnand %p2093_p5, %p252_p7  ;;  %s2634_s18 = smov [#allocation7]  }
  0x13   : > { %s264_s19 = sshll.u32 %s2634_s18, 4  ;;  %s2635_s21 = smov [#allocation10]   ;;  %s265_s19 = int_to_ptr.vmem [resolvable:$true] %s264_s19 }
  0x14   : > { %s3593_s17 = scalar_select %p2754_p8, 1, 0 }
  0x15   : > { %p2256_p9 = pneg %p2754_p8  ;;  %s302_s22 = sshll.u32 %s2635_s21, 4  ;;  %s303_s22 = int_to_ptr.vmem [resolvable:$true] %s302_s22 }
  0x16   : > { %s2636_s23 = smov [#allocation9]   ;;  %s2439_s25 = scalar_lea.vmem %s265_s19, 1024 }
  0x17   : > { %p2763_p11 = pnand %p2256_p9, %p3582_p1  ;;  %s277_s24 = sshll.u32 %s2636_s23, 4  ;;  %s278_s24 = int_to_ptr.vmem [resolvable:$true] %s277_s24 }
  0x18   : > { %p2440_p13 = scmp.ne.s32.totalorder %s265_s19, %s2439_s25  ;;  %p2447_p5 = scmp.lt.s32.totalorder %s265_s19, %s265_s19 }
  0x19   : > { %p2430_p12 = pneg %p2763_p11  ;;  %p2448_p7 = scmp.lt.s32.totalorder %s2439_s25, %s2439_s25 }
  0x1b   : > { %p2442_p0 = pnand %p2440_p13, %p2430_p12  ;;  %p2449_p9 = por %p2448_p7, %p2447_p5 }
  0x1d   : > { %p2443_p3 = pneg %p2442_p0 }
  0x1f   : > { %p2450_p10 = pnand %p2449_p9, %p2443_p3 }
  0x21   : > { %2453 = shalt.err (!%p2450_p10)
}
  0x22   : > { %s2637_s26 = smov 128   ;;  %s2638_s27 = smov 8  }
  0x23   : > { %s3595_s1 = sld [smem:[#allocation18_spill]]  ;;  %s2465_s14 = scalar_lea.vmem %s303_s22, 256 }
  0x24   : > { %p2466_p13 = scmp.ne.s32.totalorder %s303_s22, %s2465_s14  ;;  %p2473_p3 = scmp.lt.s32.totalorder %s303_s22, %s303_s22 }
  0x25   : > { %p2474_p10 = scmp.lt.s32.totalorder %s2465_s14, %s2465_s14 }
  0x26   : > { %p2468_p0 = pnand %p2466_p13, %p2430_p12 }
  0x27   : > { %p2475_p7 = por %p2474_p10, %p2473_p3 }
  0x28   : > { %p2469_p5 = pneg %p2468_p0 }
  0x29   : > { %2259 = dma.hbm_to_vmem [thread:$0]  (!%p2763_p11), %s3595_s1, 1024, %s265_s19, [#allocation8], %s2637_s26, %s2637_s26, %s2638_s27  }
  0x2a   : > { %p2476_p9 = pnand %p2475_p7, %p2469_p5 }
  0x2c   : > { %2479 = shalt.err (!%p2476_p9)
}
  0x2d   : > { %s3596_s7 = sld [smem:[#allocation20_spill]]  ;;  %s2491_s19 = scalar_lea.vmem %s278_s24, 512 }
  0x2e   : > { %p2492_p1 = scmp.ne.s32.totalorder %s278_s24, %s2491_s19  ;;  %p2499_p3 = scmp.lt.s32.totalorder %s278_s24, %s278_s24 }
  0x2f   : > { %p2500_p5 = scmp.lt.s32.totalorder %s2491_s19, %s2491_s19 }
  0x30   : > { %p2494_p13 = pnand %p2492_p1, %p2430_p12 }
  0x31   : > { %p2501_p10 = por %p2500_p5, %p2499_p3 }
  0x32   : > { %p2495_p0 = pneg %p2494_p13 }
  0x33   : > { %2265 = dma.hbm_to_vmem [thread:$0]  (!%p2763_p11), %s3596_s7, 256, %s303_s22, [#allocation11], %s2637_s26, %s2637_s26, %s2638_s27  }
  0x34   : > { %p2502_p7 = pnand %p2501_p10, %p2495_p0 }
  0x36   : > { %2505 = shalt.err (!%p2502_p7)
}
  0x37   : > { %s3583_s23 = smov 64   ;;  %s3584_s25 = smov 4  }
  0x38   : > { %s3597_s2 = sld [smem:[#allocation19_spill]]  ;;  %s2641_s29 = smov [#allocation12]  }
  0x39   : > { %s315_s14 = sshll.u32 %s2641_s29, 4  ;;  %s316_s14 = int_to_ptr.vmem [resolvable:$true] %s315_s14 }
  0x3a   : > { %s2517_s18 = scalar_lea.vmem %s316_s14, 256  ;;  %p2525_p0 = scmp.lt.s32.totalorder %s316_s14, %s316_s14 }
  0x3b   : > { %p2518_p1 = scmp.ne.s32.totalorder %s316_s14, %s2517_s18  ;;  %p2526_p3 = scmp.lt.s32.totalorder %s2517_s18, %s2517_s18 }
  0x3d   : > { %p2520_p9 = pnand %p2518_p1, %p2430_p12  ;;  %p2527_p5 = por %p2526_p3, %p2525_p0 }
  0x3e   : > { %2262 = dma.hbm_to_vmem [thread:$0]  (!%p2763_p11), %s3597_s2, 512, %s278_s24, [#allocation8], %s3583_s23, %s3583_s23, %s3584_s25  }
  0x3f   : > { %p2521_p13 = pneg %p2520_p9 }
  0x41   : > { %p2528_p10 = pnand %p2527_p5, %p2521_p13 }
  0x43   : > { %2531 = shalt.err (!%p2528_p10)
}
  0x44   : > { %2268 = dma.hbm_to_vmem [thread:$0]  (!%p2763_p11), %s3580_s8, 256, %s316_s14, [#allocation11], %s2637_s26, %s2637_s26, %s2638_s27  }
  0x45   : > { %s2814_s19 = sadd.s32 1, %s2632_s12   ;;  %s34_s20 = sadd.s32 1, %s2628_s11 }
  0x46   : > { %s31_s22 = ssub.s32 %s2632_s12, %s2814_s19  ;;  %p41_p12 = scmp.ne.s32.totalorder %s2628_s11, %s2624_s10 }
  0x47   : > { %p32_p7 = scmp.eq.s32.totalorder %s31_s22, 0  ;;  %p42_p1 = scmp.eq.s32.totalorder %s2632_s12, 0 }
  0x48   : > { %p2824_p9 = por %p239_p2, %p41_p12  ;;  %p2281_p13 = scmp.lt.s32.totalorder %s2632_s12, 2 }
  0x49   : > { %s2830_s29 = scalar_select %p32_p7, %s2628_s11, %s34_s20  }
  0x4a   : > { %s3598_s28 = scalar_select %p2824_p9, 1, 0 }
  0x4b   : > { %p43_p0 = por %p42_p1, %p41_p12  ;;  %s329_s18 = sand.u32 1, %s2628_s11  }
  0x4c   : > { %s2099_s24 = sshll.u32 %s329_s18, 3  ;;  %s2153_s26 = sshll.u32 %s2632_s12, 7 }
  0x4d   : > { %s2837_s21 = scalar_lea.hbm %s3572_s0, %s2153_s26  ;;  %s333_s22 = scalar_lea.vmem [#allocation4], %s2099_s24 }
  0x4e   : > { %s340_s23 = sshll.u32 %s333_s22, 4  ;;  %p2841_p2 = pnand %p2281_p13, %p43_p0  ;;  %s2839_s23 = int_to_ptr.vmem [resolvable:$true] %s340_s23 }
  0x4f   : > { %s2845_s20 = scalar_lea.sflag [#allocation5], %s329_s18  ;;  %s2532_s1 = scalar_lea.hbm %s2837_s21, 128 }
  0x50   : > { %p2533_p11 = scmp.ne.s32.totalorder %s2837_s21, %s2532_s1  ;;  %p2534_p3 = pneg %p2841_p2 }
  0x51   : > { %s2537_s24 = scalar_lea.hbm %s3572_s0, 256  ;;  %p2538_p12 = scmp.lt.s32.totalorder %s2837_s21, %s3572_s0 }
  0x52   : > { %p2535_p5 = pnand %p2534_p3, %p2533_p11  ;;  %p2539_p7 = scmp.lt.s32.totalorder %s2537_s24, %s2532_s1 }
  0x54   : > { %p2536_p10 = pneg %p2535_p5  ;;  %p2540_p1 = por %p2539_p7, %p2538_p12 }
  0x56   : > { %p2541_p13 = pnand %p2540_p1, %p2536_p10 }
  0x58   : > { %2544 = shalt.err (!%p2541_p13)
}
  0x59   : > { %s2545_s18 = scalar_lea.vmem %s2839_s23, 128  ;;  %s2642_s2 = smov [#allocation4]  }
  0x5a   : > { %p2546_p0 = scmp.ne.s32.totalorder %s2839_s23, %s2545_s18  ;;  %s2550_s7 = sshll.u32 %s2642_s2, 4  ;;  %s2551_s7 = int_to_ptr.vmem [resolvable:$false] %s2550_s7 }
  0x5b   : > { %s2552_s26 = scalar_lea.vmem %s2551_s7, 256  ;;  %p2553_p5 = scmp.lt.s32.totalorder %s2839_s23, %s2551_s7 }
  0x5c   : > { %p2548_p6 = pnand %p2546_p0, %p2534_p3  ;;  %p2554_p9 = scmp.lt.s32.totalorder %s2552_s26, %s2545_s18 }
  0x5e   : > { %p2549_p11 = pneg %p2548_p6  ;;  %p2555_p4 = por %p2554_p9, %p2553_p5 }
  0x60   : > { %p2556_p8 = pnand %p2555_p4, %p2549_p11 }
  0x62   : > { %2559 = shalt.err (!%p2556_p8)
}
  0x63   : > { %s3600_s1 = smov 4   ;;  %s3601_s27 = smov 64  }
  0x64   : > { %2272 = dma.hbm_to_vmem [thread:$0]  (!%p2841_p2), %s2837_s21, 128, %s2839_s23, %s2845_s20, %s3601_s27, %s3601_s27, %s3600_s1  }
  0x65   : > { %p3602_p6 = scmp.ne.s32.totalorder %s3593_s17, 0 }
  0x66   : > { %s2872_s2 = sand.u32 (!%p3602_p6), 1, %s2624_s10   ;;  %p3603_p4 = scmp.ne.s32.totalorder (!%p3602_p6), %s3591_s15, 0 }
  0x67   : > { %352 = sbr.rel (%p3602_p6) target bundleno = 3447 (0xd77), region = 56  ;;  %s2103_s7 = sshll.u32 (!%p3602_p6), %s2872_s2, 3 }
  0x68   : > { %s355_s24 = scalar_lea.sflag (!%p3602_p6), [#allocation5], %s2872_s2  ;;  %s358_s14 = scalar_lea.vmem (!%p3602_p6), [#allocation4], %s2103_s7 }
  0x6c   : > { %2603 = dma.done.wait (%p3603_p4), %s355_s24, 128  }
  0x6d   : > { %2605 = vsyncadd (%p3603_p4), %s355_s24, 4294967168  ;;  %p3604_p8 = scmp.eq.s32.totalorder %s2735_s13, 0 }
  0x6f   : > { %2607 = dma.done.wait (%p3604_p8), [#allocation8], 1536   ;;  %p3605_p9 = pmov %p3604_p8 }
  0x70   : > { %p3606_p2 = pmov %p3604_p8 }
  0x71   : > { %2609 = vsyncadd (%p3605_p9), [#allocation8], 4294965760 }
  0x72   : > { %2611 = dma.done.wait (%p3606_p2), [#allocation11], 512   ;;  %p3607_p3 = pmov %p3606_p2 }
  0x73   : > { %v2643_v0 = vmov 0   ;;  %v2347_v1 = vld [vmem:[#allocation7 + $0x34] ss:$8 sps:$4 sm:$0xff]   ;;  %v2349_v2 = vld [vmem:[#allocation7 + $0x30] ss:$8 sps:$4 sm:$0xff]   ;;  %vm465_vm0 = vcmask 523264  }
  0x74   : > { %2613 = vsyncadd (%p3607_p3), [#allocation11], 4294966784  ;;  %501 = vmatprep.mubr.bf16.mxu0 %v2643_v0  ;;  %477 = vmatprep.subr.bf16.mxu0 %v2347_v1  ;;  %v2350_v3 = vld [vmem:[#allocation7 + $0x24] ss:$8 sps:$4 sm:$0xff]   ;;  %v2352_v4 = vld [vmem:[#allocation7 + $0x20] ss:$8 sps:$4 sm:$0xff]  }
  0x75   : > { %478 = vmatpush1.bf16.msra.mxu0 %v2349_v2  ;;  %v2353_v5 = vld [vmem:[#allocation7 + $0x14] ss:$8 sps:$4 sm:$0xff]   ;;  %v2355_v6 = vld [vmem:[#allocation7 + $0x10] ss:$8 sps:$4 sm:$0xff]   ;;  %v2356_v7 = vld [vmem:[#allocation7 + $0x4] ss:$8 sps:$4 sm:$0xff]  }
  0x76   : > { %479 = vmatprep.subr.bf16.mxu0 %v2350_v3  ;;  %v2358_v8 = vld [vmem:[#allocation7] ss:$8 sps:$4 sm:$0xff]   ;;  %v2359_v9 = vld [vmem:[%s358_s14] sm:$0xff]   ;;  %s2644_s23 = smov 64   ;;  %s2645_s25 = smov 32   ;;  %vm535_vm1 = vcmask 130048  }
  0x77   : > { %v2892_v10 = vld [vmem:[%s3578_s6] ss:$0 sm:$0xff]  ;;  %s2646_s22 = smov 48   ;;  %s2647_s18 = smov 112   ;;  %v528_v43 = vld [vmem:[#allocation12 + $0x8] sm:$0xff]  ;;  %v527_v44 = vld [vmem:[#allocation12] sm:$0xff] }
  0x78   : > { %673 = vrot.lane.b32.xlu1 %v2892_v10, %s2644_s23  ;;  %v2910_v15 = vld [vmem:[%s3577_s5] ss:$0 sm:$0xff]  ;;  %s2648_s26 = smov 96   ;;  %s2649_s1 = smov 16   ;;  %vm581_vm2 = vcmask 1047680   ;;  %vm2654_vm3 = vmmov 0  }
  0x79   : > { %480 = vmatpush1.bf16.msra.mxu0 %v2352_v4  ;;  %s2650_s27 = smov 8   ;;  %s2651_s7 = smov 80   ;;  %v2978_v2 = vld [vmem:[%s3575_s3] ss:$0 sm:$0xff]  ;;  %vm1187_vm6 = vcmask 261248   ;;  %vm1535_vm7 = vcmask 392448  }
  0x7a   : > { %481 = vmatprep.subr.bf16.mxu0 %v2353_v5  ;;  %v2985_v5 = vld [vmem:[%s3576_s4] ss:$0 sm:$0xff]  ;;  %s2652_s21 = smov 56   ;;  %s2655_s20 = smov 120   ;;  %vm1883_vm8 = vcmask 523648  }
  0x7b   : > { %s2658_s24 = smov 88   ;;  %s2659_s14 = smov 24  }
  0x7c   : > { %s2660_s15 = smov 104   ;;  %s2661_s17 = smov 40  }
  0x7d   : > { %482 = vmatpush1.bf16.msra.mxu0 %v2355_v6  ;;  %p3608_p12 = scmp.ne.s32.totalorder %s3598_s28, 0 }
  0x7e   : > { %483 = vmatprep.subr.bf16.mxu0 %v2356_v7 }
  0x81   : > { %484 = vmatpush1.bf16.msra.mxu0 %v2358_v8 }
  0x84   : > { %2118 = vmatmul.mubr.msk.bf16.vlgmr.msra.gmra.mxu0 %vm465_vm0, %v2359_v9 }
  0xea   : > { %v2935_v22 = vpop.permute.xlu1 %673 }
 0x144   : > { %v2896_v11 = vpop.f32.mrf.mxu0 }
 0x145   : > { %1300 = vrot.lane.b32.xlu1 %v2896_v11, %s2645_s25  ;;  %618 = vrot.lane.b32.xlu0 %v2896_v11, %s2644_s23  ;;  %v536_v17 = vsel %vm535_vm1, %v2896_v11, 0.0 }
 0x146   : > { %v505_v12 = vpop.f32.mrf.mxu0 }
 0x147   : > { %513 = vst.msk [vmem:[#allocation2 + $0x8] sm:$0xff] %vm465_vm0, %v505_v12 }
 0x148   : > { %v2903_v13 = vpop.f32.mrf.mxu0 }
 0x149   : > { %620 = vrot.lane.b32.xlu0 %v2903_v13, %s2644_s23  ;;  %v539_v16 = vsel %vm535_vm1, %v2903_v13, 0.0 }
 0x14a   : > { %v509_v14 = vpop.f32.mrf.mxu0 }
 0x14b   : > { %515 = vst.msk [vmem:[#allocation2 + $0x18] sm:$0xff] %vm465_vm0, %v509_v14 }
 0x14d   : > { %663 = vrot.lane.b32.xlu0 %v2910_v15, %s2644_s23 }
 0x169   : > { %540 = vadd.xlane.f32.xlu1 %v539_v16 }
 0x16c   : > { %537 = vadd.xlane.f32.xlu0 %v536_v17 }
 0x182   : > { %952 = vrot.lane.b32.xlu0 %v2896_v11, %s2646_s22 }
 0x186   : > { %850 = vrot.lane.b32.xlu0 %v2896_v11, %s2647_s18 }
 0x18a   : > { %954 = vrot.lane.b32.xlu0 %v2903_v13, %s2646_s22 }
 0x18e   : > { %852 = vrot.lane.b32.xlu0 %v2903_v13, %s2647_s18 }
 0x192   : > { %1302 = vrot.lane.b32.xlu0 %v2903_v13, %s2645_s25 }
 0x196   : > { %1200 = vrot.lane.b32.xlu0 %v2903_v13, %s2648_s26 }
 0x1b7   : > { %v619_v18 = vpop.permute.xlu0 %618  ;;  %v2937_v23 = vpop.permute.xlu1 %1300 }
 0x1b8   : > { %v624_v19 = vsel %vm535_vm1, %v619_v18, 0.0 }
 0x1b9   : > { %625 = vadd.xlane.f32.xlu1 %v624_v19 }
 0x1bb   : > { %v621_v20 = vpop.permute.xlu0 %620 }
 0x1bc   : > { %v627_v21 = vsel %vm535_vm1, %v621_v20, 0.0 }
 0x1bd   : > { %628 = vadd.xlane.f32.xlu1 %v627_v21 }
 0x1bf   : > { %v2939_v24 = vpop.permute.xlu0 %663 }
 0x1ce   : > { %1198 = vrot.lane.b32.xlu1 %v2896_v11, %s2648_s26 }
 0x1f2   : > { %v541_v25 = vpop.xlane.xlu1 %540 }
 0x1f3   : > { %v544_v26 = vmul.f32 0.0625, %v541_v25 }
 0x1f5   : > { %v546_v27 = vsub.f32 %v2903_v13, %v544_v26  ;;  %v538_v28 = vpop.xlane.xlu0 %537 }
 0x1f6   : > { %v543_v29 = vmul.f32 0.0625, %v538_v28 }
 0x1f7   : > { %v548_v30 = vmul.f32 %v546_v27, %v546_v27 }
 0x1f8   : > { %v545_v31 = vsub.f32 %v2896_v11, %v543_v29 }
 0x1f9   : > { %v552_v32 = vsel %vm535_vm1, %v548_v30, 0.0  ;;  %v953_v45 = vpop.permute.xlu0 %952 }
 0x1fa   : > { %553 = vadd.xlane.f32.xlu1 %v552_v32  ;;  %v547_v33 = vmul.f32 %v545_v31, %v545_v31  ;;  %v958_v12 = vsel %vm535_vm1, %v953_v45, 0.0 }
 0x1fc   : > { %v549_v34 = vsel %vm535_vm1, %v547_v33, 0.0 }
 0x1fd   : > { %550 = vadd.xlane.f32.xlu0 %v549_v34  ;;  %v851_v46 = vpop.permute.xlu0 %850 }
 0x1fe   : > { %v856_v9 = vsel %vm535_vm1, %v851_v46, 0.0 }
 0x201   : > { %v955_v47 = vpop.permute.xlu0 %954 }
 0x202   : > { %v961_v8 = vsel %vm535_vm1, %v955_v47, 0.0 }
 0x205   : > { %v853_v48 = vpop.permute.xlu0 %852 }
 0x206   : > { %v859_v14 = vsel %vm535_vm1, %v853_v48, 0.0 }
 0x209   : > { %v2967_v49 = vpop.permute.xlu0 %1302 }
 0x20d   : > { %v2969_v50 = vpop.permute.xlu0 %1200 }
 0x20e   : > { %v1207_v47 = vsel %vm535_vm1, %v2969_v50, 0.0  ;;  %v3039_v50 = vld [vmem:[#allocation10 + $0x8] sm:$0xff] }
 0x242   : > { %v626_v35 = vpop.xlane.xlu1 %625 }
 0x243   : > { %v630_v36 = vmul.f32 0.0625, %v626_v35 }
 0x245   : > { %v2946_v37 = vsub.f32 %v2896_v11, %v630_v36 }
 0x246   : > { %v629_v38 = vpop.xlane.xlu1 %628 }
 0x247   : > { %v631_v39 = vmul.f32 0.0625, %v629_v38  ;;  %v634_v40 = vmul.f32 %v2946_v37, %v2946_v37 }
 0x249   : > { %v2951_v41 = vsub.f32 %v2903_v13, %v631_v39  ;;  %638 = vrot.lane.b32.xlu0 %v634_v40, %s2644_s23  ;;  %v1309_v40 = vsel %vm535_vm1, %v2967_v49, 0.0 }
 0x24a   : > { %v2971_v51 = vpop.permute.xlu1 %1198 }
 0x24b   : > { %v635_v42 = vmul.f32 %v2951_v41, %v2951_v41 }
 0x24d   : > { %1650 = vrot.lane.b32.xlu0 %v2903_v13, %s2649_s1  ;;  %640 = vrot.lane.b32.xlu1 %v635_v42, %s2644_s23 }
 0x251   : > { %598 = vrot.lane.b32.xlu0 %v528_v43, %s2650_s27  ;;  %1648 = vrot.lane.b32.xlu1 %v2896_v11, %s2649_s1 }
 0x255   : > { %1548 = vrot.lane.b32.xlu0 %v2903_v13, %s2651_s7  ;;  %596 = vrot.lane.b32.xlu1 %v527_v44, %s2650_s27 }
 0x259   : > { %1546 = vrot.lane.b32.xlu1 %v2896_v11, %s2651_s7 }
 0x283   : > { %v554_v53 = vpop.xlane.xlu1 %553 }
 0x284   : > { %v556_v55 = vmul.f32 0.0625, %v554_v53 }
 0x286   : > { %v551_v52 = vpop.xlane.xlu0 %550  ;;  %v558_v57 = vadd.f32 1e-05, %v556_v55 }
 0x287   : > { %v555_v54 = vmul.f32 0.0625, %v551_v52 }
 0x289   : > { %v557_v56 = vadd.f32 1e-05, %v555_v54 }
 0x28b   : > { %2364 = vrsqrt.f32 %v557_v56 }
 0x28c   : > { %2366 = vrsqrt.f32 %v558_v57  ;;  %v3043_v57 = vld [vmem:[#allocation10] sm:$0xff] }
 0x298   : > { %v2365_v62 = vpop.eup %2364 }
 0x299   : > { %v2367_v63 = vpop.eup %2366  ;;  %v561_v0 = vmul.f32 %v2365_v62, %v545_v31 }
 0x29a   : > { %v562_v1 = vmul.f32 %v2367_v63, %v546_v27 }
 0x29b   : > { %v569_v3 = vmul.f32 %v2978_v2, %v561_v0 }
 0x29c   : > { %v570_v4 = vmul.f32 %v2978_v2, %v562_v1 }
 0x29d   : > { %v2988_v6 = vadd.f32 %v2985_v5, %v569_v3 }
 0x29e   : > { %v2991_v7 = vadd.f32 %v2985_v5, %v570_v4 }
 0x2bb   : > { %v639_v58 = vpop.permute.xlu0 %638 }
 0x2bc   : > { %v644_v59 = vsel %vm535_vm1, %v639_v58, 0.0 }
 0x2bd   : > { %645 = vadd.xlane.f32.xlu0 %v644_v59 }
 0x2bf   : > { %v641_v60 = vpop.permute.xlu1 %640  ;;  %v1651_v16 = vpop.permute.xlu0 %1650 }
 0x2c0   : > { %v647_v61 = vsel %vm535_vm1, %v641_v60, 0.0  ;;  %v1657_v56 = vsel %vm535_vm1, %v1651_v16, 0.0 }
 0x2c1   : > { %648 = vadd.xlane.f32.xlu1 %v647_v61 }
 0x2c3   : > { %v1649_v17 = vpop.permute.xlu1 %1648  ;;  %v3001_v18 = vpop.permute.xlu0 %598 }
 0x2c7   : > { %v3003_v19 = vpop.permute.xlu1 %596  ;;  %v3005_v20 = vpop.permute.xlu0 %1548 }
 0x2c8   : > { %v1555_v3 = vsel %vm535_vm1, %v3005_v20, 0.0 }
 0x2cb   : > { %v3007_v21 = vpop.permute.xlu1 %1546 }
 0x2cc   : > { %v1552_v4 = vsel %vm535_vm1, %v3007_v21, 0.0 }
 0x2d2   : > { %582 = vrot.lane.b32.xlu1 %v2988_v6, %s2649_s1 }
 0x2d3   : > { %585 = vrot.lane.b32.xlu0 %v2991_v7, %s2649_s1 }
 0x2f2   : > { %962 = vadd.xlane.f32.xlu0 %v961_v8 }
 0x2f6   : > { %857 = vadd.xlane.f32.xlu0 %v856_v9  ;;  %959 = vadd.xlane.f32.xlu1 %v958_v12 }
 0x2fa   : > { %860 = vadd.xlane.f32.xlu1 %v859_v14 }
 0x346   : > { %v646_v25 = vpop.xlane.xlu0 %645 }
 0x347   : > { %v650_v26 = vmul.f32 0.0625, %v646_v25 }
 0x349   : > { %v652_v27 = vadd.f32 1e-05, %v650_v26 }
 0x34a   : > { %v649_v28 = vpop.xlane.xlu1 %648 }
 0x34b   : > { %2368 = vrsqrt.f32 %v652_v27  ;;  %v651_v29 = vmul.f32 0.0625, %v649_v28 }
 0x34d   : > { %v653_v30 = vadd.f32 1e-05, %v651_v29 }
 0x34e   : > { %v583_v42 = vpop.permute.xlu1 %582 }
 0x34f   : > { %2370 = vrsqrt.f32 %v653_v30  ;;  %v584_v27 = vsel %vm581_vm2, %v583_v42, %v2988_v6 }
 0x358   : > { %v2369_v31 = vpop.eup %2368 }
 0x359   : > { %v656_v32 = vmul.f32 %v2369_v31, %v2946_v37  ;;  %v1306_v37 = vsel %vm535_vm1, %v2937_v23, 0.0  ;;  %v1204_v23 = vsel %vm535_vm1, %v2971_v51, 0.0  ;;  %v1654_v51 = vsel %vm535_vm1, %v1649_v17, 0.0 }
 0x35b   : > { %v666_v33 = vmul.f32 %v2939_v24, %v656_v32 }
 0x35c   : > { %v2371_v34 = vpop.eup %2370 }
 0x35d   : > { %v3012_v35 = vadd.f32 %v2935_v22, %v666_v33  ;;  %v657_v36 = vmul.f32 %v2371_v34, %v2951_v41  ;;  %v586_v41 = vpop.permute.xlu0 %585 }
 0x35e   : > { %v587_v16 = vsel %vm581_vm2, %v586_v41, %v2991_v7 }
 0x35f   : > { %690 = vrot.lane.b32.xlu0 %v3012_v35, %s2644_s23  ;;  %v667_v38 = vmul.f32 %v2939_v24, %v657_v36 }
 0x361   : > { %v3019_v39 = vadd.f32 %v2935_v22, %v667_v38 }
 0x363   : > { %692 = vrot.lane.b32.xlu1 %v3019_v39, %s2644_s23 }
 0x37b   : > { %v963_v43 = vpop.xlane.xlu0 %962 }
 0x37c   : > { %v965_v9 = vmul.f32 0.0625, %v963_v43 }
 0x37e   : > { %1307 = vadd.xlane.f32.xlu0 %v1306_v37  ;;  %v3064_v17 = vsub.f32 %v2903_v13, %v965_v9 }
 0x37f   : > { %v960_v44 = vpop.xlane.xlu1 %959  ;;  %v858_v45 = vpop.xlane.xlu0 %857 }
 0x380   : > { %v964_v8 = vmul.f32 0.0625, %v960_v44  ;;  %v862_v20 = vmul.f32 0.0625, %v858_v45  ;;  %v969_v28 = vmul.f32 %v3064_v17, %v3064_v17 }
 0x382   : > { %v3058_v12 = vsub.f32 %v2896_v11, %v964_v8  ;;  %v3078_v29 = vsub.f32 %v2896_v11, %v862_v20 }
 0x383   : > { %v861_v24 = vpop.xlane.xlu1 %860 }
 0x384   : > { %v863_v14 = vmul.f32 0.0625, %v861_v24  ;;  %v968_v26 = vmul.f32 %v3058_v12, %v3058_v12  ;;  %v866_v34 = vmul.f32 %v3078_v29, %v3078_v29  ;;  %v2653_v24 = vmov 0.0  }
 0x385   : > { %2176 = vmatprep.subr.bf16.mxu1 %v2653_v24  ;;  %2200 = vmatprep.subr.bf16.mxu0 %v2653_v24 }
 0x386   : > { %v3067_v25 = vsub.f32 %v2903_v13, %v863_v14  ;;  %2178 = vmatprep.mubr.msk.bf16.mxu1 %vm2654_vm3, %v2653_v24  ;;  %2202 = vmatprep.mubr.msk.bf16.mxu0 %vm2654_vm3, %v2653_v24 }
 0x387   : > { %1310 = vadd.xlane.f32.xlu1 %v1309_v40 }
 0x388   : > { %v867_v32 = vmul.f32 %v3067_v25, %v3067_v25 }
 0x3d1   : > { %v691_v46 = vpop.permute.xlu0 %690 }
 0x3d2   : > { %696 = vrot.lane.b32.xlu0 %v691_v46, %s2649_s1 }
 0x3d5   : > { %v693_v22 = vpop.permute.xlu1 %692 }
 0x3d6   : > { %699 = vrot.lane.b32.xlu1 %v693_v22, %s2649_s1 }
 0x3f1   : > { %1205 = vadd.xlane.f32.xlu0 %v1204_v23 }
 0x3fa   : > { %1208 = vadd.xlane.f32.xlu1 %v1207_v47 }
 0x407   : > { %v1308_v48 = vpop.xlane.xlu0 %1307 }
 0x408   : > { %v1312_v30 = vmul.f32 0.0625, %v1308_v48 }
 0x40a   : > { %v3088_v33 = vsub.f32 %v2896_v11, %v1312_v30 }
 0x40c   : > { %v1316_v38 = vmul.f32 %v3088_v33, %v3088_v33 }
 0x410   : > { %v1311_v49 = vpop.xlane.xlu1 %1310 }
 0x411   : > { %v1313_v21 = vmul.f32 0.0625, %v1311_v49 }
 0x413   : > { %v3081_v31 = vsub.f32 %v2903_v13, %v1313_v21 }
 0x415   : > { %v1317_v36 = vmul.f32 %v3081_v31, %v3081_v31 }
 0x444   : > { %v697_v52 = vpop.permute.xlu0 %696 }
 0x445   : > { %v698_v53 = vsel %vm581_vm2, %v697_v52, %v691_v46 }
 0x446   : > { %702 = vrot.lane.b32.xlu1 %v698_v53, %s2649_s1 }
 0x448   : > { %v700_v54 = vpop.permute.xlu1 %699 }
 0x449   : > { %v701_v55 = vsel %vm581_vm2, %v700_v54, %v693_v22 }
 0x44a   : > { %704 = vrot.lane.b32.xlu0 %v701_v55, %s2649_s1 }
 0x469   : > { %1655 = vadd.xlane.f32.xlu0 %v1654_v51 }
 0x46a   : > { %1658 = vadd.xlane.f32.xlu1 %v1657_v56 }
 0x47a   : > { %v1206_v59 = vpop.xlane.xlu0 %1205 }
 0x47b   : > { %682 = vrot.lane.b32.xlu1 %v3039_v50, %s2644_s23 }
 0x47f   : > { %680 = vrot.lane.b32.xlu0 %v3043_v57, %s2644_s23 }
 0x483   : > { %v3047_v58 = vpop.xlane.xlu1 %1208 }
 0x484   : > { %v1211_v51 = vmul.f32 0.0625, %v3047_v58 }
 0x4b8   : > { %v703_v60 = vpop.permute.xlu1 %702 }
 0x4b9   : > { %v706_v61 = vsel %vm581_vm2, %v703_v60, %v691_v46  ;;  %v1210_v46 = vmul.f32 0.0625, %v1206_v59 }
 0x4ba   : > { %v708_v62 = vmul.f32 %v706_v61, %v3003_v19 }
 0x4bb   : > { %v3102_v47 = vsub.f32 %v2896_v11, %v1210_v46  ;;  %v579_v46 = vmul.f32 %v2988_v6, %v3043_v57 }
 0x4bc   : > { %v705_v63 = vpop.permute.xlu0 %704  ;;  %712 = vrot.lane.b32.xlu1 %v708_v62, %s2652_s21  ;;  %v3123_v62 = vsub.f32 %v2903_v13, %v1211_v51  ;;  %v532_v51 = vld [vmem:[#allocation2 + $0x18] sm:$0xff] }
 0x4bd   : > { %v707_v0 = vsel %vm581_vm2, %v705_v63, %v693_v22 }
 0x4be   : > { %v709_v1 = vmul.f32 %v707_v0, %v3001_v18  ;;  %v1215_v9 = vmul.f32 %v3123_v62, %v3123_v62 }
 0x4c0   : > { %714 = vrot.lane.b32.xlu0 %v709_v1, %s2652_s21 }
 0x4df   : > { %1556 = vadd.xlane.f32.xlu0 %v1555_v3 }
 0x4e0   : > { %1553 = vadd.xlane.f32.xlu1 %v1552_v4 }
 0x4f1   : > { %590 = vrot.lane.b32.xlu1 %v587_v16, %s2649_s1 }
 0x4f2   : > { %v1656_v37 = vpop.xlane.xlu0 %1655 }
 0x4f3   : > { %v1659_v40 = vpop.xlane.xlu1 %1658  ;;  %v1660_v53 = vmul.f32 0.0625, %v1656_v37 }
 0x4f4   : > { %v1661_v63 = vmul.f32 0.0625, %v1659_v40 }
 0x4f5   : > { %588 = vrot.lane.b32.xlu0 %v584_v27, %s2649_s1  ;;  %972 = vrot.lane.b32.xlu1 %v968_v26, %s2646_s22  ;;  %v3118_v61 = vsub.f32 %v2896_v11, %v1660_v53 }
 0x4f6   : > { %v681_v41 = vpop.permute.xlu0 %680  ;;  %v3133_v4 = vsub.f32 %v2903_v13, %v1661_v63 }
 0x4f7   : > { %v683_v42 = vpop.permute.xlu1 %682  ;;  %v686_v56 = vmul.f32 %v681_v41, %v3012_v35  ;;  %v1214_v35 = vmul.f32 %v3102_v47, %v3102_v47  ;;  %v1664_v3 = vmul.f32 %v3118_v61, %v3118_v61 }
 0x4f8   : > { %v687_v48 = vmul.f32 %v683_v42, %v3019_v39  ;;  %v1665_v16 = vmul.f32 %v3133_v4, %v3133_v4 }
 0x4f9   : > { %974 = vrot.lane.b32.xlu0 %v969_v28, %s2646_s22  ;;  %872 = vrot.lane.b32.xlu1 %v867_v32, %s2647_s18 }
 0x4fd   : > { %870 = vrot.lane.b32.xlu0 %v866_v34, %s2647_s18  ;;  %1322 = vrot.lane.b32.xlu1 %v1317_v36, %s2645_s25 }
 0x501   : > { %1320 = vrot.lane.b32.xlu0 %v1316_v38, %s2645_s25 }
 0x52e   : > { %v713_v44 = vpop.permute.xlu1 %712 }
 0x52f   : > { %v718_v39 = vadd.f32 %v713_v44, %v686_v56 }
 0x532   : > { %v715_v43 = vpop.permute.xlu0 %714 }
 0x533   : > { %v719_v59 = vadd.f32 %v715_v43, %v687_v48 }
 0x535   : > { %v721_v0 = vpack.c.bf16 %v719_v59, %v718_v39 }
 0x568   : > { %v1557_v45 = vpop.xlane.xlu0 %1556 }
 0x569   : > { %v1554_v22 = vpop.xlane.xlu1 %1553  ;;  %v1559_v8 = vmul.f32 0.0625, %v1557_v45 }
 0x56a   : > { %v1558_v58 = vmul.f32 0.0625, %v1554_v22  ;;  %v580_v22 = vmul.f32 %v2991_v7, %v3039_v50 }
 0x56c   : > { %v589_v23 = vpop.permute.xlu0 %588  ;;  %v3128_v1 = vsub.f32 %v2896_v11, %v1558_v58  ;;  %v3142_v11 = vsub.f32 %v2903_v13, %v1559_v8 }
 0x56d   : > { %v592_v49 = vsel %vm581_vm2, %v589_v23, %v2988_v6  ;;  %v591_v52 = vpop.permute.xlu1 %590 }
 0x56e   : > { %v602_v54 = vmul.f32 %v3003_v19, %v592_v49  ;;  %v593_v55 = vsel %vm581_vm2, %v591_v52, %v2991_v7  ;;  %v1562_v14 = vmul.f32 %v3128_v1, %v3128_v1  ;;  %v1563_v20 = vmul.f32 %v3142_v11, %v3142_v11  ;;  %v531_v7 = vld [vmem:[#allocation2 + $0x8] sm:$0xff] }
 0x56f   : > { %v603_v60 = vmul.f32 %v3001_v18, %v593_v55  ;;  %v3167_v39 = vpack.c.bf16 %v532_v51, %v531_v7 }
 0x570   : > { %606 = vrot.lane.b32.xlu0 %v602_v54, %s2655_s20  ;;  %v975_v21 = vpop.permute.xlu0 %974 }
 0x571   : > { %608 = vrot.lane.b32.xlu1 %v603_v60, %s2655_s20  ;;  %v973_v26 = vpop.permute.xlu1 %972  ;;  %v981_v36 = vsel %vm535_vm1, %v975_v21, 0.0  ;;  %s1968_s20 = scalar_lea.sflag [#allocation6], %s2872_s2 }
 0x572   : > { %v978_v27 = vsel %vm535_vm1, %v973_v26, 0.0 }
 0x574   : > { %1218 = vrot.lane.b32.xlu0 %v1214_v35, %s2648_s26  ;;  %v871_v28 = vpop.permute.xlu0 %870 }
 0x575   : > { %723 = vrot.lane.b32.xlu1 %v721_v0, %s2644_s23  ;;  %v873_v13 = vpop.permute.xlu1 %872  ;;  %v876_v30 = vsel %vm535_vm1, %v871_v28, 0.0  ;;  %s2656_s23 = smov 72  }
 0x576   : > { %v879_v32 = vsel %vm535_vm1, %v873_v13, 0.0 }
 0x578   : > { %1668 = vrot.lane.b32.xlu0 %v1664_v3, %s2649_s1  ;;  %v1321_v38 = vpop.permute.xlu0 %1320 }
 0x579   : > { %1220 = vrot.lane.b32.xlu1 %v1215_v9, %s2648_s26  ;;  %v1323_v34 = vpop.permute.xlu1 %1322  ;;  %v1326_v40 = vsel %vm535_vm1, %v1321_v38, 0.0 }
 0x57a   : > { %v1329_v37 = vsel %vm535_vm1, %v1323_v34, 0.0 }
 0x57c   : > { %1566 = vrot.lane.b32.xlu0 %v1562_v14, %s2651_s7 }
 0x57d   : > { %1670 = vrot.lane.b32.xlu1 %v1665_v16, %s2649_s1 }
 0x581   : > { %1568 = vrot.lane.b32.xlu1 %v1563_v20, %s2651_s7 }
 0x59b   : > { %979 = vadd.xlane.f32.xlu0 %v978_v27 }
 0x59f   : > { %877 = vadd.xlane.f32.xlu0 %v876_v30 }
 0x5a3   : > { %880 = vadd.xlane.f32.xlu0 %v879_v32 }
 0x5a5   : > { %982 = vadd.xlane.f32.xlu1 %v981_v36 }
 0x5a7   : > { %1330 = vadd.xlane.f32.xlu0 %v1329_v37 }
 0x5a9   : > { %1327 = vadd.xlane.f32.xlu1 %v1326_v40 }
 0x5e2   : > { %v607_v41 = vpop.permute.xlu0 %606 }
 0x5e3   : > { %v609_v42 = vpop.permute.xlu1 %608  ;;  %v612_v48 = vadd.f32 %v607_v41, %v579_v46 }
 0x5e4   : > { %v613_v49 = vadd.f32 %v609_v42, %v580_v22 }
 0x5e6   : > { %v1219_v43 = vpop.permute.xlu0 %1218  ;;  %v720_v6 = vpack.c.bf16 %v613_v49, %v612_v48 }
 0x5e7   : > { %v724_v44 = vpop.permute.xlu1 %723  ;;  %v1224_v45 = vsel %vm535_vm1, %v1219_v43, 0.0 }
 0x5e8   : > { %1225 = vadd.xlane.f32.xlu1 %v1224_v45  ;;  %v729_v23 = vsel %vm535_vm1, %v724_v44, 0 }
 0x5e9   : > { %2177 = vmatpush3.bf16.xpose.msra.mxu1 %v729_v23 }
 0x5ea   : > { %v1669_v52 = vpop.permute.xlu0 %1668  ;;  %2182 = vmatprep.subr.bf16.mxu1 %v2653_v24 }
 0x5eb   : > { %v1221_v53 = vpop.permute.xlu1 %1220  ;;  %v1674_v54 = vsel %vm535_vm1, %v1669_v52, 0.0 }
 0x5ec   : > { %1675 = vadd.xlane.f32.xlu1 %v1674_v54  ;;  %v1227_v55 = vsel %vm535_vm1, %v1221_v53, 0.0 }
 0x5ed   : > { %1228 = vadd.xlane.f32.xlu0 %v1227_v55 }
 0x5ee   : > { %v1567_v56 = vpop.permute.xlu0 %1566 }
 0x5ef   : > { %v1671_v59 = vpop.permute.xlu1 %1670  ;;  %v1572_v60 = vsel %vm535_vm1, %v1567_v56, 0.0 }
 0x5f0   : > { %1573 = vadd.xlane.f32.xlu1 %v1572_v60  ;;  %2179 = vmatmul.mubr.msk.bf16.vlgmr.msra.gmra.mxu1 %vm535_vm1, %v720_v6  ;;  %v1677_v58 = vsel %vm535_vm1, %v1671_v59, 0.0 }
 0x5f1   : > { %1678 = vadd.xlane.f32.xlu0 %v1677_v58  ;;  %2183 = vmatpush3.bf16.msra.mxu1 %v3167_v39 }
 0x5f2   : > { %2184 = vmatprep.mubr.msk.bf16.mxu1 %vm2654_vm3, %v2653_v24  ;;  %2188 = vmatprep.subr.bf16.mxu1 %v2653_v24 }
 0x5f3   : > { %v1569_v35 = vpop.permute.xlu1 %1568 }
 0x5f4   : > { %v1575_v63 = vsel %vm535_vm1, %v1569_v35, 0.0 }
 0x5f5   : > { %1576 = vadd.xlane.f32.xlu0 %v1575_v63 }
 0x601   : > { %997 = vrot.lane.b32.xlu1 %v2910_v15, %s2651_s7 }
 0x605   : > { %895 = vrot.lane.b32.xlu1 %v2978_v2, %s2649_s1 }
 0x609   : > { %1345 = vrot.lane.b32.xlu1 %v2910_v15, %s2648_s26 }
 0x60b   : > { %1007 = vrot.lane.b32.xlu0 %v2892_v10, %s2651_s7 }
 0x60d   : > { %1355 = vrot.lane.b32.xlu1 %v2892_v10, %s2648_s26 }
 0x60f   : > { %905 = vrot.lane.b32.xlu0 %v2985_v5, %s2649_s1 }
 0x611   : > { %1693 = vrot.lane.b32.xlu1 %v2910_v15, %s2647_s18 }
 0x613   : > { %1243 = vrot.lane.b32.xlu0 %v2978_v2, %s2645_s25 }
 0x615   : > { %1703 = vrot.lane.b32.xlu1 %v2892_v10, %s2647_s18 }
 0x617   : > { %1253 = vrot.lane.b32.xlu0 %v2985_v5, %s2645_s25 }
 0x619   : > { %1601 = vrot.lane.b32.xlu1 %v2985_v5, %s2646_s22 }
 0x61b   : > { %1591 = vrot.lane.b32.xlu0 %v2978_v2, %s2646_s22 }
 0x624   : > { %v980_v0 = vpop.xlane.xlu0 %979 }
 0x625   : > { %v984_v15 = vmul.f32 0.0625, %v980_v0 }
 0x627   : > { %v986_v16 = vadd.f32 1e-05, %v984_v15 }
 0x628   : > { %v878_v3 = vpop.xlane.xlu0 %877 }
 0x629   : > { %v882_v20 = vmul.f32 0.0625, %v878_v3  ;;  %2372 = vrsqrt.f32 %v986_v16 }
 0x62b   : > { %v884_v13 = vadd.f32 1e-05, %v882_v20 }
 0x62c   : > { %v881_v8 = vpop.xlane.xlu0 %880 }
 0x62d   : > { %v883_v26 = vmul.f32 0.0625, %v881_v8 }
 0x62e   : > { %v983_v9 = vpop.xlane.xlu1 %982 }
 0x62f   : > { %v985_v14 = vmul.f32 0.0625, %v983_v9  ;;  %v885_v5 = vadd.f32 1e-05, %v883_v26 }
 0x630   : > { %v1331_v21 = vpop.xlane.xlu0 %1330 }
 0x631   : > { %v987_v10 = vadd.f32 1e-05, %v985_v14  ;;  %v1333_v28 = vmul.f32 0.0625, %v1331_v21 }
 0x632   : > { %v1328_v27 = vpop.xlane.xlu1 %1327 }
 0x633   : > { %v1332_v30 = vmul.f32 0.0625, %v1328_v27  ;;  %2374 = vrsqrt.f32 %v987_v10  ;;  %v1335_v32 = vadd.f32 1e-05, %v1333_v28 }
 0x634   : > { %2376 = vrsqrt.f32 %v884_v13 }
 0x635   : > { %v1334_v34 = vadd.f32 1e-05, %v1332_v30  ;;  %2378 = vrsqrt.f32 %v885_v5 }
 0x636   : > { %2380 = vrsqrt.f32 %v1335_v32  ;;  %v2373_v23 = vpop.eup %2372 }
 0x637   : > { %2382 = vrsqrt.f32 %v1334_v34  ;;  %v990_v6 = vmul.f32 %v2373_v23, %v3058_v12 }
 0x640   : > { %v2375_v49 = vpop.eup %2374 }
 0x641   : > { %v2377_v51 = vpop.eup %2376  ;;  %v991_v56 = vmul.f32 %v2375_v49, %v3064_v17 }
 0x642   : > { %v2379_v59 = vpop.eup %2378  ;;  %v888_v3 = vmul.f32 %v2377_v51, %v3078_v29 }
 0x643   : > { %v2381_v0 = vpop.eup %2380  ;;  %v889_v15 = vmul.f32 %v2379_v59, %v3067_v25 }
 0x644   : > { %v2383_v9 = vpop.eup %2382  ;;  %v1339_v21 = vmul.f32 %v2381_v0, %v3081_v31 }
 0x645   : > { %v1338_v29 = vmul.f32 %v2383_v9, %v3088_v33 }
 0x671   : > { %v1226_v2 = vpop.xlane.xlu1 %1225 }
 0x672   : > { %v1230_v36 = vmul.f32 0.0625, %v1226_v2 }
 0x674   : > { %v1232_v37 = vadd.f32 1e-05, %v1230_v36 }
 0x675   : > { %v1676_v38 = vpop.xlane.xlu1 %1675 }
 0x676   : > { %v1680_v40 = vmul.f32 0.0625, %v1676_v38  ;;  %v1229_v41 = vpop.xlane.xlu0 %1228  ;;  %2384 = vrsqrt.f32 %v1232_v37 }
 0x677   : > { %v1231_v42 = vmul.f32 0.0625, %v1229_v41 }
 0x678   : > { %v1682_v45 = vadd.f32 1e-05, %v1680_v40 }
 0x679   : > { %v1233_v43 = vadd.f32 1e-05, %v1231_v42  ;;  %v1574_v44 = vpop.xlane.xlu1 %1573 }
 0x67a   : > { %v1578_v46 = vmul.f32 0.0625, %v1574_v44  ;;  %v1679_v22 = vpop.xlane.xlu0 %1678 }
 0x67b   : > { %2386 = vrsqrt.f32 %v1233_v43  ;;  %v1681_v48 = vmul.f32 0.0625, %v1679_v22 }
 0x67c   : > { %v1580_v52 = vadd.f32 1e-05, %v1578_v46  ;;  %2388 = vrsqrt.f32 %v1682_v45 }
 0x67d   : > { %v1683_v53 = vadd.f32 1e-05, %v1681_v48  ;;  %v998_v54 = vpop.permute.xlu1 %997 }
 0x67e   : > { %v1577_v55 = vpop.xlane.xlu0 %1576  ;;  %v1000_v60 = vmul.f32 %v998_v54, %v990_v6  ;;  %v1001_v58 = vmul.f32 %v998_v54, %v991_v56 }
 0x67f   : > { %2390 = vrsqrt.f32 %v1683_v53  ;;  %v1579_v7 = vmul.f32 0.0625, %v1577_v55 }
 0x680   : > { %2392 = vrsqrt.f32 %v1580_v52 }
 0x681   : > { %v1581_v35 = vadd.f32 1e-05, %v1579_v7  ;;  %v896_v63 = vpop.permute.xlu1 %895 }
 0x682   : > { %v1008_v8 = vpop.permute.xlu0 %1007  ;;  %v898_v17 = vmul.f32 %v896_v63, %v888_v3  ;;  %v899_v16 = vmul.f32 %v896_v63, %v889_v15 }
 0x683   : > { %2394 = vrsqrt.f32 %v1581_v35  ;;  %v3204_v14 = vadd.f32 %v1008_v8, %v1000_v60  ;;  %v3206_v12 = vadd.f32 %v1008_v8, %v1001_v58  ;;  %v2385_v10 = vpop.eup %2384 }
 0x684   : > { %v1236_v36 = vmul.f32 %v2385_v10, %v3102_v47 }
 0x685   : > { %1024 = vrot.lane.b32.xlu1 %v3206_v12, %s2646_s22  ;;  %1022 = vrot.lane.b32.xlu0 %v3204_v14, %s2646_s22  ;;  %v1346_v20 = vpop.permute.xlu1 %1345 }
 0x686   : > { %v906_v26 = vpop.permute.xlu0 %905  ;;  %v1348_v13 = vmul.f32 %v1346_v20, %v1338_v29  ;;  %v1349_v30 = vmul.f32 %v1346_v20, %v1339_v21 }
 0x687   : > { %v3214_v25 = vadd.f32 %v906_v26, %v898_v17  ;;  %v3216_v27 = vadd.f32 %v906_v26, %v899_v16 }
 0x688   : > { %v2387_v28 = vpop.eup %2386 }
 0x689   : > { %922 = vrot.lane.b32.xlu1 %v3216_v27, %s2647_s18  ;;  %920 = vrot.lane.b32.xlu0 %v3214_v25, %s2647_s18  ;;  %v1356_v5 = vpop.permute.xlu1 %1355  ;;  %v1237_v33 = vmul.f32 %v2387_v28, %v3123_v62  ;;  %v2389_v34 = vpop.eup %2388 }
 0x68a   : > { %v3223_v32 = vadd.f32 %v1356_v5, %v1348_v13  ;;  %v3225_v31 = vadd.f32 %v1356_v5, %v1349_v30  ;;  %v1244_v2 = vpop.permute.xlu0 %1243  ;;  %v1686_v43 = vmul.f32 %v2389_v34, %v3118_v61 }
 0x68b   : > { %v1246_v37 = vmul.f32 %v1244_v2, %v1236_v36  ;;  %v1247_v40 = vmul.f32 %v1244_v2, %v1237_v33 }
 0x68c   : > { %v2391_v38 = vpop.eup %2390 }
 0x68d   : > { %1372 = vrot.lane.b32.xlu1 %v3225_v31, %s2645_s25  ;;  %1370 = vrot.lane.b32.xlu0 %v3223_v32, %s2645_s25  ;;  %v1687_v41 = vmul.f32 %v2391_v38, %v3133_v4  ;;  %v1694_v62 = vpop.permute.xlu1 %1693  ;;  %v2393_v42 = vpop.eup %2392 }
 0x68e   : > { %v1254_v44 = vpop.permute.xlu0 %1253  ;;  %v1696_v23 = vmul.f32 %v1694_v62, %v1686_v43  ;;  %v1584_v49 = vmul.f32 %v2393_v42, %v3128_v1 }
 0x68f   : > { %v1697_v45 = vmul.f32 %v1694_v62, %v1687_v41  ;;  %v3234_v46 = vadd.f32 %v1254_v44, %v1246_v37  ;;  %v3236_v47 = vadd.f32 %v1254_v44, %v1247_v40 }
 0x690   : > { %v2395_v22 = vpop.eup %2394 }
 0x691   : > { %1270 = vrot.lane.b32.xlu1 %v3236_v47, %s2648_s26  ;;  %1268 = vrot.lane.b32.xlu0 %v3234_v46, %s2648_s26  ;;  %v1704_v48 = vpop.permute.xlu1 %1703  ;;  %v1585_v4 = vmul.f32 %v2395_v22, %v3142_v11 }
 0x692   : > { %v3244_v61 = vadd.f32 %v1704_v48, %v1696_v23  ;;  %v3246_v52 = vadd.f32 %v1704_v48, %v1697_v45  ;;  %v1592_v53 = vpop.permute.xlu0 %1591 }
 0x693   : > { %v1594_v54 = vmul.f32 %v1592_v53, %v1584_v49  ;;  %v1595_v55 = vmul.f32 %v1592_v53, %v1585_v4 }
 0x695   : > { %1720 = vrot.lane.b32.xlu1 %v3246_v52, %s2649_s1  ;;  %1718 = vrot.lane.b32.xlu0 %v3244_v61, %s2649_s1  ;;  %v1602_v51 = vpop.permute.xlu1 %1601 }
 0x696   : > { %v3252_v6 = vadd.f32 %v1602_v51, %v1594_v54  ;;  %v3254_v56 = vadd.f32 %v1602_v51, %v1595_v55 }
 0x699   : > { %1618 = vrot.lane.b32.xlu1 %v3254_v56, %s2651_s7  ;;  %1616 = vrot.lane.b32.xlu0 %v3252_v6, %s2651_s7 }
 0x6b0   : > { %v3260_v1 = vpop.f32.mrf.mxu1 }
 0x6b2   : > { %v2180_v11 = vpop.f32.mrf.mxu1 }
 0x6b3   : > { %v516_v11 = vlaneseq }
 0x6b4   : > { %v3262_v7 = vpop.f32.mrf.mxu1 }
 0x6b6   : > { %v2181_v59 = vpop.f32.mrf.mxu1 }
 0x6b7   : > { %v517_v59 = vshrl.u32 %v516_v11, 7 }
 0x6f7   : > { %v3264_v60 = vpop.permute.xlu0 %1022  ;;  %v3266_v58 = vpop.permute.xlu1 %1024 }
 0x6f8   : > { %1028 = vrot.lane.b32.xlu0 %v3264_v60, %s2649_s1  ;;  %1031 = vrot.lane.b32.xlu1 %v3266_v58, %s2649_s1 }
 0x6fb   : > { %v3272_v35 = vpop.permute.xlu0 %920  ;;  %v3274_v63 = vpop.permute.xlu1 %922 }
 0x6fc   : > { %926 = vrot.lane.b32.xlu0 %v3272_v35, %s2649_s1  ;;  %929 = vrot.lane.b32.xlu1 %v3274_v63, %s2649_s1 }
 0x6ff   : > { %v3280_v0 = vpop.permute.xlu0 %1370  ;;  %v3282_v3 = vpop.permute.xlu1 %1372 }
 0x700   : > { %1376 = vrot.lane.b32.xlu0 %v3280_v0, %s2649_s1  ;;  %1379 = vrot.lane.b32.xlu1 %v3282_v3, %s2649_s1 }
 0x703   : > { %v3288_v8 = vpop.permute.xlu0 %1268  ;;  %v3290_v9 = vpop.permute.xlu1 %1270 }
 0x704   : > { %1274 = vrot.lane.b32.xlu0 %v3288_v8, %s2649_s1  ;;  %1277 = vrot.lane.b32.xlu1 %v3290_v9, %s2649_s1 }
 0x707   : > { %v3296_v15 = vpop.permute.xlu0 %1718  ;;  %v3298_v17 = vpop.permute.xlu1 %1720 }
 0x708   : > { %1724 = vrot.lane.b32.xlu0 %v3296_v15, %s2649_s1  ;;  %1727 = vrot.lane.b32.xlu1 %v3298_v17, %s2649_s1 }
 0x70b   : > { %v3304_v16 = vpop.permute.xlu0 %1616  ;;  %v3306_v20 = vpop.permute.xlu1 %1618 }
 0x70c   : > { %1622 = vrot.lane.b32.xlu0 %v3304_v16, %s2649_s1  ;;  %1625 = vrot.lane.b32.xlu1 %v3306_v20, %s2649_s1 }
 0x76a   : > { %v1029_v29 = vpop.permute.xlu0 %1028  ;;  %v1032_v21 = vpop.permute.xlu1 %1031 }
 0x76b   : > { %v1030_v26 = vsel %vm581_vm2, %v1029_v29, %v3264_v60  ;;  %v1033_v10 = vsel %vm581_vm2, %v1032_v21, %v3266_v58  ;;  %v520_v29 = vand.u32 127, %v516_v11  ;;  %v518_v21 = vadd.s32 8, %v517_v59 }
 0x76c   : > { %1034 = vrot.lane.b32.xlu0 %v1030_v26, %s2649_s1  ;;  %1036 = vrot.lane.b32.xlu1 %v1033_v10, %s2649_s1  ;;  %v2657_v26 = vmov -1e+30  }
 0x76d   : > { %vm521_vm4 = vcmp.le.s32.totalorder %v520_v29, %v517_v59  ;;  %vm522_vm5 = vcmp.le.s32.totalorder %v520_v29, %v518_v21 }
 0x76e   : > { %v927_v28 = vpop.permute.xlu0 %926  ;;  %v930_v13 = vpop.permute.xlu1 %929  ;;  %v3358_v10 = vsel %vm521_vm4, 0.0, %v2657_v26 }
 0x76f   : > { %v928_v30 = vsel %vm581_vm2, %v927_v28, %v3272_v35  ;;  %v931_v5 = vsel %vm581_vm2, %v930_v13, %v3274_v63 }
 0x770   : > { %932 = vrot.lane.b32.xlu0 %v928_v30, %s2649_s1  ;;  %934 = vrot.lane.b32.xlu1 %v931_v5, %s2649_s1 }
 0x772   : > { %v1377_v33 = vpop.permute.xlu0 %1376  ;;  %v1380_v2 = vpop.permute.xlu1 %1379 }
 0x773   : > { %v1378_v34 = vsel %vm581_vm2, %v1377_v33, %v3280_v0  ;;  %v1381_v36 = vsel %vm581_vm2, %v1380_v2, %v3282_v3 }
 0x774   : > { %1382 = vrot.lane.b32.xlu0 %v1378_v34, %s2649_s1  ;;  %1384 = vrot.lane.b32.xlu1 %v1381_v36, %s2649_s1 }
 0x776   : > { %v1275_v38 = vpop.permute.xlu0 %1274  ;;  %v1278_v37 = vpop.permute.xlu1 %1277 }
 0x777   : > { %v1276_v40 = vsel %vm581_vm2, %v1275_v38, %v3288_v8  ;;  %v1279_v41 = vsel %vm581_vm2, %v1278_v37, %v3290_v9 }
 0x778   : > { %1280 = vrot.lane.b32.xlu0 %v1276_v40, %s2649_s1  ;;  %1282 = vrot.lane.b32.xlu1 %v1279_v41, %s2649_s1 }
 0x77a   : > { %v1725_v62 = vpop.permute.xlu0 %1724  ;;  %v1728_v42 = vpop.permute.xlu1 %1727 }
 0x77b   : > { %v1726_v43 = vsel %vm581_vm2, %v1725_v62, %v3296_v15  ;;  %v1729_v44 = vsel %vm581_vm2, %v1728_v42, %v3298_v17 }
 0x77c   : > { %1730 = vrot.lane.b32.xlu0 %v1726_v43, %s2649_s1  ;;  %1732 = vrot.lane.b32.xlu1 %v1729_v44, %s2649_s1 }
 0x77e   : > { %v1623_v45 = vpop.permute.xlu0 %1622  ;;  %v1626_v22 = vpop.permute.xlu1 %1625 }
 0x77f   : > { %v1624_v23 = vsel %vm581_vm2, %v1623_v45, %v3304_v16  ;;  %v1627_v48 = vsel %vm581_vm2, %v1626_v22, %v3306_v20 }
 0x780   : > { %1628 = vrot.lane.b32.xlu0 %v1624_v23, %s2649_s1  ;;  %1630 = vrot.lane.b32.xlu1 %v1627_v48, %s2649_s1 }
 0x784   : > { %1012 = vrot.lane.b32.xlu0 %v3043_v57, %s2651_s7  ;;  %1014 = vrot.lane.b32.xlu1 %v3039_v50, %s2651_s7 }
 0x7de   : > { %v1035_v4 = vpop.permute.xlu0 %1034  ;;  %v1037_v49 = vpop.permute.xlu1 %1036 }
 0x7df   : > { %v1038_v53 = vsel %vm581_vm2, %v1035_v4, %v3264_v60  ;;  %v1039_v54 = vsel %vm581_vm2, %v1037_v49, %v3266_v58  ;;  %v3362_v60 = vadd.f32 %v3260_v1, %v3358_v10  ;;  %v3364_v58 = vsel %vm522_vm5, 0.0, %v2657_v26 }
 0x7e0   : > { %v1040_v55 = vmul.f32 %v1038_v53, %v3003_v19  ;;  %v1041_v51 = vmul.f32 %v1039_v54, %v3001_v18  ;;  %v3370_v13 = vadd.f32 %v3262_v7, %v3364_v58 }
 0x7e1   : > { %v772_v28 = vsel %vm535_vm1, %v3362_v60, -inf }
 0x7e2   : > { %1044 = vrot.lane.b32.xlu0 %v1040_v55, %s2656_s23  ;;  %1046 = vrot.lane.b32.xlu1 %v1041_v51, %s2656_s23  ;;  %v775_v30 = vsel %vm535_vm1, %v3370_v13, -inf  ;;  %v933_v5 = vpop.permute.xlu0 %932  ;;  %v935_v33 = vpop.permute.xlu1 %934 }
 0x7e3   : > { %v936_v1 = vsel %vm581_vm2, %v933_v5, %v3272_v35  ;;  %v937_v7 = vsel %vm581_vm2, %v935_v33, %v3274_v63 }
 0x7e4   : > { %v938_v36 = vmul.f32 %v936_v1, %v3003_v19  ;;  %v939_v38 = vmul.f32 %v937_v7, %v3001_v18 }
 0x7e6   : > { %v1383_v2 = vpop.permute.xlu0 %1382  ;;  %v1385_v34 = vpop.permute.xlu1 %1384 }
 0x7e7   : > { %v1386_v37 = vsel %vm581_vm2, %v1383_v2, %v3280_v0  ;;  %v1387_v35 = vsel %vm581_vm2, %v1385_v34, %v3282_v3 }
 0x7e8   : > { %v1388_v63 = vmul.f32 %v1386_v37, %v3003_v19  ;;  %v1389_v40 = vmul.f32 %v1387_v35, %v3001_v18 }
 0x7ea   : > { %v1281_v41 = vpop.permute.xlu0 %1280  ;;  %v1283_v62 = vpop.permute.xlu1 %1282 }
 0x7eb   : > { %v1284_v0 = vsel %vm581_vm2, %v1281_v41, %v3288_v8  ;;  %v1285_v3 = vsel %vm581_vm2, %v1283_v62, %v3290_v9 }
 0x7ec   : > { %v1286_v44 = vmul.f32 %v1284_v0, %v3003_v19  ;;  %v1287_v45 = vmul.f32 %v1285_v3, %v3001_v18 }
 0x7ee   : > { %v1731_v42 = vpop.permute.xlu0 %1730  ;;  %v1733_v43 = vpop.permute.xlu1 %1732 }
 0x7ef   : > { %v1734_v22 = vsel %vm581_vm2, %v1731_v42, %v3296_v15  ;;  %v1735_v8 = vsel %vm581_vm2, %v1733_v43, %v3298_v17 }
 0x7f0   : > { %v1736_v9 = vmul.f32 %v1734_v22, %v3003_v19  ;;  %v1737_v23 = vmul.f32 %v1735_v8, %v3001_v18 }
 0x7f2   : > { %v1629_v48 = vpop.permute.xlu0 %1628  ;;  %v1631_v4 = vpop.permute.xlu1 %1630 }
 0x7f3   : > { %v1632_v49 = vsel %vm581_vm2, %v1629_v48, %v3304_v16  ;;  %v1633_v15 = vsel %vm581_vm2, %v1631_v4, %v3306_v20 }
 0x7f4   : > { %v1634_v17 = vmul.f32 %v1632_v49, %v3003_v19  ;;  %v1635_v53 = vmul.f32 %v1633_v15, %v3001_v18 }
 0x7f6   : > { %v1013_v54 = vpop.permute.xlu0 %1012  ;;  %v1015_v51 = vpop.permute.xlu1 %1014 }
 0x7f7   : > { %v1019_v41 = vmul.f32 %v1015_v51, %v3206_v12 }
 0x801   : > { %773 = vmax.xlane.f32.xlu0 %v772_v28 }
 0x806   : > { %776 = vmax.xlane.f32.xlu1 %v775_v30 }
 0x817   : > { %910 = vrot.lane.b32.xlu0 %v3043_v57, %s2649_s1  ;;  %912 = vrot.lane.b32.xlu1 %v3039_v50, %s2649_s1 }
 0x81b   : > { %1360 = vrot.lane.b32.xlu0 %v3043_v57, %s2648_s26  ;;  %1362 = vrot.lane.b32.xlu1 %v3039_v50, %s2648_s26 }
 0x81f   : > { %942 = vrot.lane.b32.xlu0 %v938_v36, %s2650_s27  ;;  %944 = vrot.lane.b32.xlu1 %v939_v38, %s2650_s27 }
 0x823   : > { %1392 = vrot.lane.b32.xlu0 %v1388_v63, %s2658_s24  ;;  %1394 = vrot.lane.b32.xlu1 %v1389_v40, %s2658_s24  ;;  %v1018_v40 = vmul.f32 %v1013_v54, %v3204_v14 }
 0x827   : > { %1258 = vrot.lane.b32.xlu0 %v3043_v57, %s2645_s25  ;;  %1260 = vrot.lane.b32.xlu1 %v3039_v50, %s2645_s25 }
 0x82b   : > { %1708 = vrot.lane.b32.xlu0 %v3043_v57, %s2647_s18  ;;  %1710 = vrot.lane.b32.xlu1 %v3039_v50, %s2647_s18 }
 0x82f   : > { %1290 = vrot.lane.b32.xlu0 %v1286_v44, %s2659_s14  ;;  %1292 = vrot.lane.b32.xlu1 %v1287_v45, %s2659_s14 }
 0x833   : > { %1740 = vrot.lane.b32.xlu0 %v1736_v9, %s2660_s15  ;;  %1742 = vrot.lane.b32.xlu1 %v1737_v23, %s2660_s15 }
 0x837   : > { %1606 = vrot.lane.b32.xlu0 %v3043_v57, %s2646_s22  ;;  %1608 = vrot.lane.b32.xlu1 %v3039_v50, %s2646_s22 }
 0x83b   : > { %1638 = vrot.lane.b32.xlu0 %v1634_v17, %s2661_s17  ;;  %1640 = vrot.lane.b32.xlu1 %v1635_v53, %s2661_s17 }
 0x854   : > { %v1045_v55 = vpop.permute.xlu0 %1044  ;;  %v1047_v11 = vpop.permute.xlu1 %1046 }
 0x855   : > { %v1050_v0 = vadd.f32 %v1045_v55, %v1018_v40  ;;  %v1051_v3 = vadd.f32 %v1047_v11, %v1019_v41 }
 0x857   : > { %v1053_v14 = vpack.c.bf16 %v1051_v3, %v1050_v0 }
 0x88a   : > { %v774_v16 = vpop.xlane.xlu0 %773 }
 0x88b   : > { %v778_v20 = vsub.f32 %v3362_v60, %v774_v16 }
 0x88d   : > { %v780_v59 = vmul.f32 1.442695, %v778_v20 }
 0x88e   : > { %v911_v29 = vpop.permute.xlu0 %910 }
 0x88f   : > { %2396 = vpow2.f32 %v780_v59  ;;  %v777_v57 = vpop.xlane.xlu1 %776  ;;  %v916_v42 = vmul.f32 %v911_v29, %v3214_v25 }
 0x890   : > { %v779_v50 = vsub.f32 %v3370_v13, %v777_v57 }
 0x892   : > { %v782_v21 = vmul.f32 1.442695, %v779_v50  ;;  %v1361_v19 = vpop.permute.xlu0 %1360 }
 0x893   : > { %v913_v26 = vpop.permute.xlu1 %912  ;;  %v1366_v23 = vmul.f32 %v1361_v19, %v3223_v32 }
 0x894   : > { %2398 = vpow2.f32 %v782_v21  ;;  %v917_v62 = vmul.f32 %v913_v26, %v3216_v27 }
 0x896   : > { %v943_v18 = vpop.permute.xlu0 %942 }
 0x897   : > { %v1363_v28 = vpop.permute.xlu1 %1362  ;;  %v948_v8 = vadd.f32 %v943_v18, %v916_v42 }
 0x898   : > { %v1367_v44 = vmul.f32 %v1363_v28, %v3225_v31 }
 0x89a   : > { %v1393_v30 = vpop.permute.xlu0 %1392 }
 0x89b   : > { %v945_v5 = vpop.permute.xlu1 %944  ;;  %v1398_v49 = vadd.f32 %v1393_v30, %v1366_v23 }
 0x89c   : > { %v3428_v33 = vpop.eup %2396  ;;  %v949_v43 = vadd.f32 %v945_v5, %v917_v62 }
 0x89d   : > { %v784_v1 = vsel %vm535_vm1, %v3428_v33, 0.0 }
 0x89e   : > { %785 = vadd.xlane.f32.xlu0 %v784_v1  ;;  %v1259_v60 = vpop.permute.xlu0 %1258  ;;  %v1052_v4 = vpack.c.bf16 %v949_v43, %v948_v8 }
 0x89f   : > { %v1395_v7 = vpop.permute.xlu1 %1394  ;;  %v1264_v12 = vmul.f32 %v1259_v60, %v3234_v46 }
 0x8a0   : > { %v1399_v48 = vadd.f32 %v1395_v7, %v1367_v44 }
 0x8a1   : > { %v3432_v2 = vpop.eup %2398 }
 0x8a2   : > { %v1709_v34 = vpop.permute.xlu0 %1708  ;;  %v787_v13 = vsel %vm535_vm1, %v3432_v2, 0.0  ;;  %v1401_v31 = vpack.c.bf16 %v1399_v48, %v1398_v49 }
 0x8a3   : > { %788 = vadd.xlane.f32.xlu1 %v787_v13  ;;  %v1261_v36 = vpop.permute.xlu1 %1260 }
 0x8a4   : > { %v1265_v9 = vmul.f32 %v1261_v36, %v3236_v47  ;;  %v1714_v47 = vmul.f32 %v1709_v34, %v3244_v61 }
 0x8a6   : > { %v1291_v38 = vpop.permute.xlu0 %1290 }
 0x8a7   : > { %v1711_v37 = vpop.permute.xlu1 %1710  ;;  %v1296_v17 = vadd.f32 %v1291_v38, %v1264_v12 }
 0x8a8   : > { %v1715_v25 = vmul.f32 %v1711_v37, %v3246_v52 }
 0x8aa   : > { %v1741_v35 = vpop.permute.xlu0 %1740 }
 0x8ab   : > { %v1293_v63 = vpop.permute.xlu1 %1292  ;;  %v1746_v16 = vadd.f32 %v1741_v35, %v1714_v47 }
 0x8ac   : > { %v1297_v27 = vadd.f32 %v1293_v63, %v1265_v9 }
 0x8ae   : > { %v1607_v45 = vpop.permute.xlu0 %1606  ;;  %v1400_v32 = vpack.c.bf16 %v1297_v27, %v1296_v17 }
 0x8af   : > { %v1743_v22 = vpop.permute.xlu1 %1742  ;;  %v1612_v54 = vmul.f32 %v1607_v45, %v3252_v6 }
 0x8b0   : > { %v1747_v55 = vadd.f32 %v1743_v22, %v1715_v25 }
 0x8b2   : > { %v1639_v53 = vpop.permute.xlu0 %1638  ;;  %v1749_v52 = vpack.c.bf16 %v1747_v55, %v1746_v16 }
 0x8b3   : > { %v1609_v15 = vpop.permute.xlu1 %1608  ;;  %v1644_v11 = vadd.f32 %v1639_v53, %v1612_v54 }
 0x8b4   : > { %1058 = vrot.lane.b32.xlu0 %v1053_v14, %s2646_s22  ;;  %1055 = vrot.lane.b32.xlu1 %v1052_v4, %s2647_s18  ;;  %v1613_v46 = vmul.f32 %v1609_v15, %v3254_v56 }
 0x8b7   : > { %v1641_v51 = vpop.permute.xlu1 %1640 }
 0x8b8   : > { %v1645_v20 = vadd.f32 %v1641_v51, %v1613_v46  ;;  %1406 = vrot.lane.b32.xlu0 %v1401_v31, %s2645_s25  ;;  %1403 = vrot.lane.b32.xlu1 %v1400_v32, %s2648_s26 }
 0x8ba   : > { %v1748_v59 = vpack.c.bf16 %v1645_v20, %v1644_v11 }
 0x8bc   : > { %1754 = vrot.lane.b32.xlu0 %v1749_v52, %s2649_s1  ;;  %1751 = vrot.lane.b32.xlu1 %v1748_v59, %s2651_s7 }
 0x927   : > { %v786_v61 = vpop.xlane.xlu0 %785 }
 0x928   : > { %2400 = vrcp.f32 %v786_v61 }
 0x92b   : > { %v1059_v6 = vpop.permute.xlu0 %1058 }
 0x92c   : > { %v789_v29 = vpop.xlane.xlu1 %788  ;;  %v1064_v60 = vsel %vm535_vm1, %v1059_v6, 0 }
 0x92d   : > { %2402 = vrcp.f32 %v789_v29 }
 0x92f   : > { %v1407_v56 = vpop.permute.xlu0 %1406 }
 0x930   : > { %v1412_v57 = vsel %vm535_vm1, %v1407_v56, 0  ;;  %v1056_v50 = vpop.permute.xlu1 %1055 }
 0x931   : > { %2201 = vmatpush3.bf16.xpose.msra.mxu0 %v1412_v57 }
 0x932   : > { %2212 = vmatprep.subr.bf16.mxu0 %v2653_v24 }
 0x933   : > { %v1755_v21 = vpop.permute.xlu0 %1754 }
 0x934   : > { %v1404_v19 = vpop.permute.xlu1 %1403  ;;  %v1760_v18 = vsel %vm535_vm1, %v1755_v21, 0 }
 0x935   : > { %v2401_v26 = vpop.eup %2400 }
 0x936   : > { %v792_v30 = vmul.f32 %v2401_v26, %v3428_v33 }
 0x938   : > { %2203 = vmatmul.mubr.msk.bf16.vlgmr.msra.gmra.mxu0 %vm535_vm1, %v1404_v19  ;;  %v1752_v7 = vpop.permute.xlu1 %1751 }
 0x939   : > { %2213 = vmatpush3.bf16.xpose.msra.mxu0 %v1760_v18  ;;  %2214 = vmatprep.mubr.msk.bf16.mxu0 %vm2654_vm3, %v2653_v24 }
 0x93a   : > { %v2403_v28 = vpop.eup %2402  ;;  %2224 = vmatprep.subr.bf16.mxu0 %v2653_v24 }
 0x93b   : > { %v793_v5 = vmul.f32 %v2403_v28, %v3432_v2 }
 0x93d   : > { %v794_v1 = vpack.c.bf16 %v793_v5, %v792_v30 }
 0x93f   : > { %2185 = vmatmul.mubr.msk.bf16.vlgmr.msra.gmra.mxu1 %vm535_vm1, %v794_v1 }
 0x940   : > { %2189 = vmatpush3.bf16.xpose.msra.mxu1 %v1064_v60  ;;  %2215 = vmatmul.mubr.msk.bf16.vlgmr.msra.gmra.mxu0 %vm535_vm1, %v1752_v7 }
 0x941   : > { %2190 = vmatprep.mubr.msk.bf16.mxu1 %vm2654_vm3, %v2653_v24  ;;  %2194 = vmatprep.subr.bf16.mxu1 %v2653_v24 }
 0x942   : > { %2232 = vmatprep.mubr.msk.bf16.mxu0 %vm2654_vm3, %v2653_v24 }
 0x947   : > { %2191 = vmatmul.mubr.msk.bf16.vlgmr.msra.gmra.mxu1 %vm535_vm1, %v1056_v50 }
 0x948   : > { %2196 = vmatprep.mubr.msk.bf16.mxu1 %vm2654_vm3, %v2653_v24 }
 0x9f8   : > { %v1448_v33 = vpop.f32.mrf.mxu0 }
 0x9f9   : > { %v1449_v43 = vadd.f32 %v1448_v33, %v3358_v10 }
 0x9fa   : > { %v2204_v2 = vpop.f32.mrf.mxu0 }
 0x9fb   : > { %v1455_v48 = vsel %vm535_vm1, %v1449_v43, -inf }
 0x9fc   : > { %v1451_v34 = vpop.f32.mrf.mxu0 }
 0x9fd   : > { %v1452_v9 = vadd.f32 %v1451_v34, %v3364_v58 }
 0x9fe   : > { %v2205_v13 = vpop.f32.mrf.mxu0 }
 0x9ff   : > { %v833_v36 = vpop.f32.mrf.mxu1  ;;  %v1458_v12 = vsel %vm535_vm1, %v1452_v9, -inf }
 0xa00   : > { %840 = vst.msk [vmem:[#allocation3] sm:$0xff] %vm535_vm1, %v833_v36  ;;  %v1796_v38 = vpop.f32.mrf.mxu0 }
 0xa01   : > { %v2186_v37 = vpop.f32.mrf.mxu1  ;;  %v1797_v23 = vadd.f32 %v1796_v38, %v3358_v10 }
 0xa02   : > { %v2216_v35 = vpop.f32.mrf.mxu0 }
 0xa03   : > { %v836_v63 = vpop.f32.mrf.mxu1  ;;  %v1803_v27 = vsel %vm535_vm1, %v1797_v23, -inf }
 0xa04   : > { %841 = vst.msk [vmem:[#allocation3 + $0x8] sm:$0xff] %vm535_vm1, %v836_v63  ;;  %v1799_v40 = vpop.f32.mrf.mxu0 }
 0xa05   : > { %v2187_v41 = vpop.f32.mrf.mxu1  ;;  %v1800_v4 = vadd.f32 %v1799_v40, %v3364_v58 }
 0xa06   : > { %v2217_v62 = vpop.f32.mrf.mxu0 }
 0xa07   : > { %v1100_v0 = vpop.f32.mrf.mxu1  ;;  %v1806_v49 = vsel %vm535_vm1, %v1800_v4, -inf }
 0xa08   : > { %v1101_v3 = vadd.f32 %v1100_v0, %v3358_v10 }
 0xa09   : > { %v2192_v42 = vpop.f32.mrf.mxu1 }
 0xa0a   : > { %v1107_v44 = vsel %vm535_vm1, %v1101_v3, -inf }
 0xa0b   : > { %1108 = vmax.xlane.f32.xlu0 %v1107_v44  ;;  %v1103_v45 = vpop.f32.mrf.mxu1 }
 0xa0c   : > { %v1104_v22 = vadd.f32 %v1103_v45, %v3364_v58 }
 0xa0d   : > { %v2193_v8 = vpop.f32.mrf.mxu1 }
 0xa0e   : > { %v1110_v14 = vsel %vm535_vm1, %v1104_v22, -inf }
 0xa0f   : > { %1456 = vmax.xlane.f32.xlu0 %v1455_v48  ;;  %1111 = vmax.xlane.f32.xlu1 %v1110_v14  ;;  %v2361_v14 = vld [vmem:[#allocation9 + $0x10] sm:$0xff]  }
 0xa13   : > { %1459 = vmax.xlane.f32.xlu0 %v1458_v12  ;;  %1804 = vmax.xlane.f32.xlu1 %v1803_v27  ;;  %v2362_v27 = vld [vmem:[#allocation9 + $0x8] sm:$0xff]  }
 0xa17   : > { %1807 = vmax.xlane.f32.xlu0 %v1806_v49 }
 0xa94   : > { %v1109_v15 = vpop.xlane.xlu0 %1108 }
 0xa95   : > { %v1113_v53 = vsub.f32 %v1101_v3, %v1109_v15  ;;  %v2363_v15 = vld [vmem:[#allocation9] sm:$0xff]  }
 0xa97   : > { %v1115_v11 = vmul.f32 1.442695, %v1113_v53 }
 0xa98   : > { %v1457_v17 = vpop.xlane.xlu0 %1456  ;;  %v1112_v10 = vpop.xlane.xlu1 %1111 }
 0xa99   : > { %v1461_v25 = vsub.f32 %v1449_v43, %v1457_v17  ;;  %v1114_v47 = vsub.f32 %v1104_v22, %v1112_v10 }
 0xa9b   : > { %v1463_v31 = vmul.f32 1.442695, %v1461_v25  ;;  %v1117_v46 = vmul.f32 1.442695, %v1114_v47 }
 0xa9c   : > { %v1460_v32 = vpop.xlane.xlu0 %1459  ;;  %v1805_v54 = vpop.xlane.xlu1 %1804 }
 0xa9d   : > { %2404 = vpow2.f32 %v1463_v31  ;;  %v1462_v58 = vsub.f32 %v1452_v9, %v1460_v32  ;;  %v1809_v55 = vsub.f32 %v1797_v23, %v1805_v54  ;;  %v2360_v9 = vld [vmem:[#allocation9 + $0x18] sm:$0xff]  }
 0xa9e   : > { %2225 = vmatpush3.bf16.msra.mxu0 %v2360_v9 }
 0xa9f   : > { %v1465_v51 = vmul.f32 1.442695, %v1462_v58  ;;  %v1811_v16 = vmul.f32 1.442695, %v1809_v55  ;;  %2226 = vmatprep.subr.bf16.mxu0 %v2653_v24 }
 0xaa0   : > { %v1808_v20 = vpop.xlane.xlu0 %1807 }
 0xaa1   : > { %2406 = vpow2.f32 %v1465_v51  ;;  %v1810_v52 = vsub.f32 %v1800_v4, %v1808_v20 }
 0xaa2   : > { %2408 = vpow2.f32 %v1811_v16  ;;  %2227 = vmatpush3.bf16.msra.mxu0 %v2361_v14 }
 0xaa3   : > { %2410 = vpow2.f32 %v1117_v46  ;;  %v1813_v59 = vmul.f32 1.442695, %v1810_v52  ;;  %2228 = vmatprep.subr.bf16.mxu0 %v2653_v24 }
 0xaa4   : > { %2412 = vpow2.f32 %v1115_v11 }
 0xaa5   : > { %2414 = vpow2.f32 %v1813_v59 }
 0xaa6   : > { %2229 = vmatpush3.bf16.msra.mxu0 %v2362_v27 }
 0xaa7   : > { %2230 = vmatprep.subr.bf16.mxu0 %v2653_v24 }
 0xaaa   : > { %v2405_v61 = vpop.eup %2404  ;;  %2231 = vmatpush3.bf16.msra.mxu0 %v2363_v15 }
 0xaab   : > { %v1467_v6 = vsel %vm535_vm1, %v2405_v61, 0.0 }
 0xaac   : > { %1468 = vadd.xlane.f32.xlu1 %v1467_v6 }
 0xaae   : > { %v2407_v29 = vpop.eup %2406 }
 0xaaf   : > { %v2409_v56 = vpop.eup %2408  ;;  %v1470_v57 = vsel %vm535_vm1, %v2407_v29, 0.0 }
 0xab0   : > { %v2411_v50 = vpop.eup %2410  ;;  %1471 = vadd.xlane.f32.xlu0 %v1470_v57  ;;  %v1815_v21 = vsel %vm535_vm1, %v2409_v56, 0.0 }
 0xab1   : > { %v2413_v19 = vpop.eup %2412  ;;  %1816 = vadd.xlane.f32.xlu1 %v1815_v21  ;;  %v1122_v26 = vsel %vm535_vm1, %v2411_v50, 0.0 }
 0xab2   : > { %v2415_v18 = vpop.eup %2414  ;;  %v1119_v28 = vsel %vm535_vm1, %v2413_v19, 0.0 }
 0xab3   : > { %v1818_v30 = vsel %vm535_vm1, %v2415_v18, 0.0 }
 0xab4   : > { %1123 = vadd.xlane.f32.xlu0 %v1122_v26 }
 0xab5   : > { %1120 = vadd.xlane.f32.xlu1 %v1119_v28 }
 0xab8   : > { %1819 = vadd.xlane.f32.xlu0 %v1818_v30 }
 0xac6   : > { %1132 = vrot.lane.b32.xlu1 %v3167_v39, %s2647_s18 }
 0xaca   : > { %1828 = vrot.lane.b32.xlu1 %v3167_v39, %s2651_s7 }
 0xace   : > { %1480 = vrot.lane.b32.xlu0 %v3167_v39, %s2648_s26  ;;  %s2154_s26 = sshll.u32 %s2735_s13, 8  ;;  %s2662_s13 = smov [#allocation13]  }
 0xacf   : > { %s3527_s21 = scalar_lea.hbm %s3581_s9, %s2154_s26  ;;  %s2564_s24 = sshll.u32 %s2662_s13, 4  ;;  %s2565_s24 = int_to_ptr.vmem [resolvable:$false] %s2564_s24 }
 0xad0   : > { %s2566_s14 = scalar_lea.vmem %s2565_s24, 512 }
 0xb35   : > { %v1469_v5 = vpop.xlane.xlu1 %1468 }
 0xb39   : > { %v1472_v1 = vpop.xlane.xlu0 %1471 }
 0xb3a   : > { %v1817_v60 = vpop.xlane.xlu1 %1816 }
 0xb3d   : > { %v1124_v7 = vpop.xlane.xlu0 %1123 }
 0xb3e   : > { %2416 = vrcp.f32 %v1124_v7  ;;  %v1121_v33 = vpop.xlane.xlu1 %1120 }
 0xb3f   : > { %2418 = vrcp.f32 %v1121_v33 }
 0xb40   : > { %2420 = vrcp.f32 %v1472_v1 }
 0xb41   : > { %2422 = vrcp.f32 %v1469_v5  ;;  %v1820_v34 = vpop.xlane.xlu0 %1819 }
 0xb42   : > { %v1133_v2 = vpop.permute.xlu1 %1132  ;;  %2424 = vrcp.f32 %v1820_v34 }
 0xb43   : > { %2195 = vmatpush3.bf16.msra.mxu1 %v1133_v2  ;;  %2426 = vrcp.f32 %v1817_v60 }
 0xb44   : > { %2206 = vmatprep.subr.bf16.mxu1 %v2653_v24 }
 0xb45   : > { %v1481_v63 = vpop.permute.xlu0 %1480 }
 0xb46   : > { %v1829_v42 = vpop.permute.xlu1 %1828 }
 0xb4b   : > { %v2417_v13 = vpop.eup %2416 }
 0xb4c   : > { %v2419_v36 = vpop.eup %2418  ;;  %v1128_v38 = vmul.f32 %v2417_v13, %v2411_v50 }
 0xb4d   : > { %v1127_v39 = vmul.f32 %v2419_v36, %v2413_v19  ;;  %v2421_v35 = vpop.eup %2420 }
 0xb4e   : > { %v2423_v40 = vpop.eup %2422  ;;  %v1476_v41 = vmul.f32 %v2421_v35, %v2407_v29 }
 0xb4f   : > { %v1129_v37 = vpack.c.bf16 %v1128_v38, %v1127_v39  ;;  %v1475_v62 = vmul.f32 %v2423_v40, %v2405_v61  ;;  %v2425_v3 = vpop.eup %2424 }
 0xb50   : > { %v2427_v43 = vpop.eup %2426  ;;  %v1824_v44 = vmul.f32 %v2425_v3, %v2415_v18 }
 0xb51   : > { %2197 = vmatmul.mubr.msk.bf16.vlgmr.msra.gmra.mxu1 %vm535_vm1, %v1129_v37  ;;  %v1477_v0 = vpack.c.bf16 %v1476_v41, %v1475_v62  ;;  %v1823_v45 = vmul.f32 %v2427_v43, %v2409_v56 }
 0xb52   : > { %2207 = vmatpush3.bf16.msra.mxu1 %v1481_v63  ;;  %2208 = vmatprep.mubr.msk.bf16.mxu1 %vm2654_vm3, %v2653_v24 }
 0xb53   : > { %2218 = vmatprep.subr.bf16.mxu1 %v2653_v24  ;;  %v1825_v22 = vpack.c.bf16 %v1824_v44, %v1823_v45 }
 0xb59   : > { %2209 = vmatmul.mubr.msk.bf16.vlgmr.msra.gmra.mxu1 %vm535_vm1, %v1477_v0 }
 0xb5a   : > { %2219 = vmatpush3.bf16.msra.mxu1 %v1829_v42  ;;  %2220 = vmatprep.mubr.msk.bf16.mxu1 %vm2654_vm3, %v2653_v24 }
 0xb61   : > { %2221 = vmatmul.mubr.msk.bf16.vlgmr.msra.gmra.mxu1 %vm535_vm1, %v1825_v22 }
 0xc11   : > { %v1172_v8 = vpop.f32.mrf.mxu1 }
 0xc12   : > { %1181 = vrot.lane.b32.xlu1 %v1172_v8, %s2649_s1 }
 0xc13   : > { %v2198_v23 = vpop.f32.mrf.mxu1 }
 0xc15   : > { %v1175_v48 = vpop.f32.mrf.mxu1 }
 0xc16   : > { %1183 = vrot.lane.b32.xlu0 %v1175_v48, %s2649_s1 }
 0xc17   : > { %v2199_v4 = vpop.f32.mrf.mxu1 }
 0xc19   : > { %v1520_v12 = vpop.f32.mrf.mxu1 }
 0xc1a   : > { %1529 = vrot.lane.b32.xlu1 %v1520_v12, %s2645_s25 }
 0xc1b   : > { %v2210_v49 = vpop.f32.mrf.mxu1 }
 0xc1d   : > { %v1523_v17 = vpop.f32.mrf.mxu1 }
 0xc1e   : > { %1531 = vrot.lane.b32.xlu0 %v1523_v17, %s2645_s25  ;;  %s2108_s25 = sshll.u32 %s2872_s2, 4 }
 0xc1f   : > { %v2211_v10 = vpop.f32.mrf.mxu1 }
 0xc21   : > { %v1868_v25 = vpop.f32.mrf.mxu1 }
 0xc22   : > { %1877 = vrot.lane.b32.xlu1 %v1868_v25, %s2646_s22 }
 0xc23   : > { %v2222_v31 = vpop.f32.mrf.mxu1 }
 0xc25   : > { %v1871_v47 = vpop.f32.mrf.mxu1 }
 0xc26   : > { %1879 = vrot.lane.b32.xlu0 %v1871_v47, %s2646_s22  ;;  %s408_s22 = scalar_lea.vmem [#allocation13], %s2108_s25 }
 0xc27   : > { %v2223_v53 = vpop.f32.mrf.mxu1  ;;  %s1981_s18 = sshll.u32 %s408_s22, 4  ;;  %s3522_s18 = int_to_ptr.vmem [resolvable:$true] %s1981_s18 }
 0xc28   : > { %s2560_s23 = scalar_lea.vmem %s3522_s18, 256  ;;  %p2567_p13 = scmp.lt.s32.totalorder %s3522_s18, %s2565_s24 }
 0xc29   : > { %p2561_p10 = scmp.ne.s32.totalorder %s3522_s18, %s2560_s23  ;;  %p2568_p0 = scmp.lt.s32.totalorder %s2566_s14, %s2560_s23 }
 0xc2b   : > { %p2562_p7 = pnand %p2561_p10, %p3608_p12  ;;  %p2569_p11 = por %p2568_p0, %p2567_p13 }
 0xc2d   : > { %p2563_p1 = pneg %p2562_p7 }
 0xc2f   : > { %p2570_p5 = pnand %p2569_p11, %p2563_p1 }
 0xc84   : > { %v1182_v32 = vpop.permute.xlu1 %1181 }
 0xc85   : > { %1188 = vst.msk [vmem:[#allocation3] sm:$0xff] %vm1187_vm6, %v1182_v32 }
 0xc88   : > { %v1184_v54 = vpop.permute.xlu0 %1183 }
 0xc89   : > { %1189 = vst.msk [vmem:[#allocation3 + $0x8] sm:$0xff] %vm1187_vm6, %v1184_v54 }
 0xc8c   : > { %v1530_v24 = vpop.permute.xlu1 %1529 }
 0xc8d   : > { %1536 = vst.msk [vmem:[#allocation3] sm:$0xff] %vm1535_vm7, %v1530_v24 }
 0xc90   : > { %v1532_v58 = vpop.permute.xlu0 %1531 }
 0xc91   : > { %1537 = vst.msk [vmem:[#allocation3 + $0x8] sm:$0xff] %vm1535_vm7, %v1532_v58 }
 0xc94   : > { %v1878_v55 = vpop.permute.xlu1 %1877 }
 0xc95   : > { %1884 = vst.msk [vmem:[#allocation3] sm:$0xff] %vm1883_vm8, %v1878_v55 }
 0xc98   : > { %v1880_v46 = vpop.permute.xlu0 %1879 }
 0xc99   : > { %1885 = vst.msk [vmem:[#allocation3 + $0x8] sm:$0xff] %vm1883_vm8, %v1880_v46 }
 0xc9c   : > { %v1886_v51 = vld [vmem:[#allocation3] sm:$0xff] }
 0xca0   : > { %v1887_v16 = vld [vmem:[#allocation3 + $0x8] sm:$0xff] }
 0xca1   : > { %v1888_v11 = vpack.c.bf16 %v1887_v16, %v1886_v51 }
 0xca3   : > { %2233 = vmatmul.mubr.msk.bf16.vlgmr.msra.gmra.mxu0 %vm465_vm0, %v1888_v11 }
 0xd63   : > { %v1958_v20 = vpop.f32.mrf.mxu0 }
 0xd64   : > { %1965 = vst.msk [vmem:[%s408_s22] sm:$0xff] %vm465_vm0, %v1958_v20 }
 0xd65   : > { %v2234_v52 = vpop.f32.mrf.mxu0 }
 0xd67   : > { %v1961_v59 = vpop.f32.mrf.mxu0 }
 0xd68   : > { %1966 = vst.msk [vmem:[%s408_s22 + $0x8] sm:$0xff] %vm465_vm0, %v1961_v59 }
 0xd69   : > { %v2235_v61 = vpop.f32.mrf.mxu0 }
 0xd6a   : > { %2573 = shalt.err (!%p2570_p5)
}
 0xd6b   : > { %s2574_s15 = scalar_lea.hbm %s3527_s21, 256  ;;  %s2578_s22 = scalar_lea.hbm %s3581_s9, 512 }
 0xd6c   : > { %p2575_p6 = scmp.ne.s32.totalorder %s3527_s21, %s2574_s15  ;;  %p2579_p9 = scmp.lt.s32.totalorder %s3527_s21, %s3581_s9 }
 0xd6d   : > { %p2580_p2 = scmp.lt.s32.totalorder %s2578_s22, %s2574_s15 }
 0xd6e   : > { %p2576_p4 = pnand %p2575_p6, %p3608_p12 }
 0xd6f   : > { %p2581_p3 = por %p2580_p2, %p2579_p9 }
 0xd70   : > { %p2577_p8 = pneg %p2576_p4 }
 0xd72   : > { %p2582_p10 = pnand %p2581_p3, %p2577_p8 }
 0xd74   : > { %2585 = shalt.err (!%p2582_p10)
}
 0xd75   : > { %s2663_s7 = smov 128  }
 0xd76   : > { %2254 = dma.vmem_to_hbm [thread:$0]  (%p3608_p12), %s3522_s18, 256, %s3527_s21, %s1968_s20, %s2663_s7, %s2663_s7, %s2650_s27  }
 0xd77 PF: > { %s1996_s23 = sand.u32 1, %s2620_s30   ;;  %p3609_p7 = scmp.ne.s32.totalorder %s3592_s16, 0 }
 0xd78   : > { %p3610_p1 = scmp.ge.s32.totalorder %s2632_s12, 2  ;;  %s1997_s13 = scalar_lea.sflag [#allocation6], %s1996_s23 }
 0xd7a   : > { %p2274_p13 = pnand %p3610_p1, %p3609_p7 }
 0xd7c   : > { %p2275_p0 = pneg %p2274_p13 }
 0xd7e   : > { %2615 = dma.done.wait (%p2275_p0), %s1997_s13, 256  }
 0xd7f   : > { %2617 = vsyncadd (%p2275_p0), %s1997_s13, 4294967040  ;;  %p24_p11 = scmp.ge.s32.totalorder %s2814_s19, 4   ;;  %s3611_s30 = smov %s2624_s10 }
 0xd80   : > { %s3612_s10 = smov %s2628_s11  ;;  %s3613_s11 = smov %s2830_s29 }
 0xd81   : > { %s3614_s12 = smov %s2814_s19  ;;  %26 = sbr.rel (!%p24_p11) target bundleno = 11 (0xb), region = 117 }
 0xd86   :  { %2002 = vsyncpa [#allocation5], 1 }
 0xd87   :  { %2004 = vsyncpa [#allocation5 + $0x1], 1 }
 0xd88   :  { %2005 = vsyncpa [#allocation8], 1 }
 0xd89   :  { %2006 = vsyncpa [#allocation11], 1 }
 0xd8a   :  { %2007 = vsyncpa [#allocation6], 1 }
 0xd8b   :  { %2009 = vsyncpa [#allocation6 + $0x1], 1 }

</bundles_post_ra>
